<compile_context>
chip_gen: v6e
topology: v6e:2x2x1
jax: 0.10.0
libtpu: 0.0.40
codegen_flags: <defaults>
</compile_context>

<pallas_src>
import jax
import jax.numpy as jnp
from jax.experimental import pallas as pl
from jax.experimental.pallas import tpu as pltpu

NUM_ATOM_TYPE = 119
NUM_CHIRALITY_TAG = 3
NUM_BOND_TYPE = 5
NUM_BOND_DIRECTION = 3
BN_EPS = 1e-5


def _round_up(x, m):
    return ((x + m - 1) // m) * m


def _pad2(a, shape):
    out = jnp.zeros(shape, a.dtype)
    return out.at[: a.shape[0], : a.shape[1]].set(a)


# ----------------------------------------------------------------------------
# Fused kernel: all GINE layers (+BN+ReLU) + mean-pool + feat_lin + pred_head
# ----------------------------------------------------------------------------
def ginet_fused_kernel(h0_ref, a_ref, c_ref, winv_ref, e_ref,
                       w1_ref, b1_ref, w2_ref, b2_ref, gamma_ref, beta_ref,
                       pool_ref, fw_ref, fb_ref,
                       pw1_ref, pb1_ref, pw2_ref, pb2_ref, pw3_ref, pb3_ref,
                       feat_ref, pred_ref, h_vmem):
    layer = pl.program_id(0)
    n_layers = pl.num_programs(0)

    @pl.when(layer == 0)
    def _():
        h_vmem[...] = h0_ref[...]

    h = h_vmem[...]                                    # [Np, D] bf16

    # Message aggregation: self-loop adjacency @ h + edge-type counts @ stacked
    # edge embeddings.  bf16 operands, f32 accumulation on the MXU.
    aggr = (jnp.dot(a_ref[...], h, preferred_element_type=jnp.float32)
            + jnp.dot(c_ref[...], e_ref[0], preferred_element_type=jnp.float32))

    # GINE update MLP: Linear(D,2D) -> ReLU -> Linear(2D,D); weights bf16.
    hid = jnp.dot(aggr.astype(jnp.bfloat16), w1_ref[0],
                  preferred_element_type=jnp.float32) + b1_ref[0]
    hid = jnp.maximum(hid, 0.0)
    out = jnp.dot(hid.astype(jnp.bfloat16), w2_ref[0],
                  preferred_element_type=jnp.float32) + b2_ref[0]

    # BatchNorm1d (training): single-pass masked statistics.  winv is a (1,Np)
    # f32 row of 1/count on real nodes (0 on padded rows), precomputed in glue,
    # so the per-layer count reduce and divides are gone.  The row reductions
    # run as tiny MXU matmuls; var = E[x^2] - mean^2 (biased, as torch BN).
    mean = jnp.dot(winv_ref[...], out, preferred_element_type=jnp.float32)     # [1, D]
    ex2 = jnp.dot(winv_ref[...], out * out, preferred_element_type=jnp.float32)
    var = jnp.maximum(ex2 - mean * mean, 0.0)
    y = gamma_ref[0] * (out - mean) * jax.lax.rsqrt(var + BN_EPS) + beta_ref[0]

    # ReLU on all but the last layer; dropout(p=0) == identity.  Downcast to
    # bf16 only when storing back to the scratch.
    @pl.when(layer < n_layers - 1)
    def _():
        h_vmem[...] = jnp.maximum(y, 0.0).astype(jnp.bfloat16)

    # Final layer: epilogue = global mean pool + feat_lin + pred_head.
    @pl.when(layer == n_layers - 1)
    def _():
        pooled = jnp.dot(pool_ref[...], y, preferred_element_type=jnp.float32)
        feat = jnp.dot(pooled.astype(jnp.bfloat16), fw_ref[...],
                       preferred_element_type=jnp.float32) + fb_ref[...]
        z = jnp.maximum(
            jnp.dot(feat.astype(jnp.bfloat16), pw1_ref[...],
                    preferred_element_type=jnp.float32) + pb1_ref[...], 0.0)
        z = jnp.maximum(
            jnp.dot(z.astype(jnp.bfloat16), pw2_ref[...],
                    preferred_element_type=jnp.float32) + pb2_ref[...], 0.0)
        pred = jnp.dot(z.astype(jnp.bfloat16), pw3_ref[...],
                       preferred_element_type=jnp.float32) + pb3_ref[...]
        feat_ref[...] = feat
        pred_ref[...] = pred


# ----------------------------------------------------------------------------
# Parameter construction (deterministic, synthetic)
# ----------------------------------------------------------------------------
def init_params(key, num_layer, emb_dim, feat_dim, out_dim):
    def nrm(k, shape, scale=0.1):
        return (scale * jax.random.normal(k, shape)).astype(jnp.float32)

    keys = jax.random.split(key, 10 + num_layer * 6)
    ki = iter(keys)
    p = {
        "x_emb1": nrm(next(ki), (NUM_ATOM_TYPE, emb_dim)),
        "x_emb2": nrm(next(ki), (NUM_CHIRALITY_TAG, emb_dim)),
        "layers": [],
        "feat_w": nrm(next(ki), (emb_dim, feat_dim)),
        "feat_b": nrm(next(ki), (1, feat_dim)),
        "pred_w1": nrm(next(ki), (feat_dim, feat_dim // 2)),
        "pred_b1": nrm(next(ki), (1, feat_dim // 2)),
        "pred_w2": nrm(next(ki), (feat_dim // 2, feat_dim // 2)),
        "pred_b2": nrm(next(ki), (1, feat_dim // 2)),
        "pred_w3": nrm(next(ki), (feat_dim // 2, out_dim)),
        "pred_b3": nrm(next(ki), (1, out_dim)),
    }
    for _ in range(num_layer):
        p["layers"].append({
            "edge_emb1": nrm(next(ki), (NUM_BOND_TYPE, emb_dim)),
            "edge_emb2": nrm(next(ki), (NUM_BOND_DIRECTION, emb_dim)),
            "w1": nrm(next(ki), (emb_dim, 2 * emb_dim)),
            "b1": nrm(next(ki), (1, 2 * emb_dim)),
            "w2": nrm(next(ki), (2 * emb_dim, emb_dim)),
            "b2": nrm(next(ki), (1, emb_dim)),
            "gamma": jnp.ones((1, emb_dim), jnp.float32),
            "beta": jnp.zeros((1, emb_dim), jnp.float32),
        })
    return p


# ----------------------------------------------------------------------------
# GINet forward (glue in plain JAX, hot path in one fused Pallas kernel)
# ----------------------------------------------------------------------------
def ginet_forward(params, x, edge_index, edge_attr, batch, num_graphs,
                  num_layer, emb_dim, feat_dim, out_dim):
    N = x.shape[0]
    D, H = emb_dim, 2 * emb_dim
    F2 = feat_dim // 2
    L = num_layer
    bf16 = jnp.bfloat16

    # Node axis padded to a multiple of 16 (bf16 sublane packing); graph axis
    # to 8.  Channel dims are NOT padded: block == full array dims is legal.
    Np = _round_up(N, 16)
    Bp = _round_up(num_graphs, 8)

    # --- self loops (bond type 4, direction 0), like the reference ---
    src = jnp.concatenate([edge_index[0], jnp.arange(N, dtype=jnp.int32)])
    tgt = jnp.concatenate([edge_index[1], jnp.arange(N, dtype=jnp.int32)])
    attr0 = jnp.concatenate([edge_attr[:, 0], jnp.full((N,), 4, jnp.int32)])
    attr1 = jnp.concatenate([edge_attr[:, 1], jnp.zeros((N,), jnp.int32)])

    # A[t, s] = multiplicity of edge s->t (small integer counts -> exact bf16)
    A = jnp.zeros((Np, Np), jnp.float32).at[tgt, src].add(1.0).astype(bf16)

    # C[t, :] = sum over edges into t of [onehot(bond,5) | onehot(dir,3)]
    ec = jnp.concatenate(
        [jax.nn.one_hot(attr0, NUM_BOND_TYPE, dtype=jnp.float32),
         jax.nn.one_hot(attr1, NUM_BOND_DIRECTION, dtype=jnp.float32)], axis=1)
    C = jnp.zeros((Np, NUM_BOND_TYPE + NUM_BOND_DIRECTION),
                  jnp.float32).at[tgt].add(ec).astype(bf16)

    # node embedding lookup (XLA gather glue), pad node rows, downcast to bf16
    h0 = (jnp.take(params["x_emb1"], x[:, 0], axis=0)
          + jnp.take(params["x_emb2"], x[:, 1], axis=0)).astype(jnp.float32)
    h0 = _pad2(h0, (Np, D)).astype(bf16)

    # BN row weights: 1/N on real nodes, 0 on padding (f32, exact) — replaces
    # the in-kernel mask sum + divides.
    winv = jnp.zeros((1, Np), jnp.float32).at[0, :N].set(1.0 / float(N))

    # per-layer stacked parameters: [L, ...]; MXU weights bf16, biases/BN f32.
    lys = params["layers"]
    E_stk = jnp.stack([jnp.concatenate([lp["edge_emb1"], lp["edge_emb2"]],
                                       axis=0) for lp in lys]).astype(bf16)     # [L,8,D]
    W1 = jnp.stack([lp["w1"] for lp in lys]).astype(bf16)                       # [L,D,H]
    B1 = jnp.stack([lp["b1"] for lp in lys])                                    # [L,1,H]
    W2 = jnp.stack([lp["w2"] for lp in lys]).astype(bf16)                       # [L,H,D]
    B2 = jnp.stack([lp["b2"] for lp in lys])                                    # [L,1,D]
    GM = jnp.stack([lp["gamma"] for lp in lys])
    BT = jnp.stack([lp["beta"] for lp in lys])

    # global mean pool matrix (kept f32 so 1/count weights are exact)
    oneb = jax.nn.one_hot(batch, num_graphs, dtype=jnp.float32).T               # [B, N]
    counts = jnp.maximum(jnp.sum(oneb, axis=1, keepdims=True), 1.0)
    pool = _pad2(oneb / counts, (Bp, Np))

    fw = params["feat_w"].astype(bf16)
    fb = params["feat_b"]
    pw1 = params["pred_w1"].astype(bf16)
    pb1 = params["pred_b1"]
    pw2 = params["pred_w2"].astype(bf16)
    pb2 = params["pred_b2"]
    pw3 = params["pred_w3"].astype(bf16)
    pb3 = params["pred_b3"]

    operands = (h0, A, C, winv, E_stk, W1, B1, W2, B2, GM, BT,
                pool, fw, fb, pw1, pb1, pw2, pb2, pw3, pb3)

    # --- VMEM footprint -> vmem_limit_bytes (resident single-buffered,
    #     per-layer slices double-buffered, + scratch + outputs) ---
    def nbytes(a):
        return int(a.size) * int(jnp.dtype(a.dtype).itemsize)

    resident = (h0, A, C, winv, pool, fw, fb, pw1, pb1, pw2, pb2, pw3, pb3)
    streamed = (E_stk, W1, B1, W2, B2, GM, BT)
    footprint = (sum(nbytes(a) for a in resident)
                 + sum(2 * nbytes(a) // L for a in streamed)
                 + Np * D * 2                                  # bf16 h scratch
                 + 2 * (Bp * feat_dim + Bp * out_dim) * 4)     # outputs
    vmem_limit = int(min(max(2 * footprint, 8 << 20), 100 << 20))

    flops = L * (2 * Np * Np * D + 2 * Np * 8 * D
                 + 2 * Np * D * H + 2 * Np * H * D + 4 * Np * D + 10 * Np * D)
    flops += (2 * Bp * Np * D + 2 * Bp * D * feat_dim + 2 * Bp * feat_dim * F2
              + 2 * Bp * F2 * F2 + 2 * Bp * F2 * out_dim)
    bytes_accessed = sum(nbytes(a) for a in operands) \
        + (Bp * feat_dim + Bp * out_dim) * 4

    def build_and_run(single_buffer):
        # rep: resident input (constant index map).  With single_buffer=True the
        # block is not double-buffered (it never changes across the grid).
        def rep(shape):
            zeros = (0,) * len(shape)
            if single_buffer:
                return pl.BlockSpec(shape, lambda l: zeros,
                                    pipeline_mode=pl.Buffered(1))
            return pl.BlockSpec(shape, lambda l: zeros)

        def out_rep(shape):
            zeros = (0,) * len(shape)
            return pl.BlockSpec(shape, lambda l: zeros)

        # perl: per-layer slice of a stacked [L, ...] array (default pipelining).
        def perl(shape):
            zeros = (0,) * len(shape)
            return pl.BlockSpec((1,) + shape, lambda l: (l,) + zeros)

        in_specs = [
            rep((Np, D)),                                     # h0 (bf16)
            rep((Np, Np)),                                    # A  (bf16)
            rep((Np, NUM_BOND_TYPE + NUM_BOND_DIRECTION)),    # C  (bf16)
            rep((1, Np)),                                     # winv (f32)
            perl((8, D)),                                     # stacked edge embeddings
            perl((D, H)),                                     # W1
            perl((1, H)),                                     # b1
            perl((H, D)),                                     # W2
            perl((1, D)),                                     # b2
            perl((1, D)),                                     # gamma
            perl((1, D)),                                     # beta
            rep((Bp, Np)),                                    # pool matrix (f32)
            rep((D, feat_dim)), rep((1, feat_dim)),           # feat_lin
            rep((feat_dim, F2)), rep((1, F2)),                # pred_head L1
            rep((F2, F2)), rep((1, F2)),                      # pred_head L2
            rep((F2, out_dim)), rep((1, out_dim)),            # pred_head L3
        ]
        out_specs = (out_rep((Bp, feat_dim)), out_rep((Bp, out_dim)))

        return pl.pallas_call(
            ginet_fused_kernel,
            out_shape=(jax.ShapeDtypeStruct((Bp, feat_dim), jnp.float32),
                       jax.ShapeDtypeStruct((Bp, out_dim), jnp.float32)),
            grid_spec=pltpu.PrefetchScalarGridSpec(
                num_scalar_prefetch=0,
                grid=(L,),
                in_specs=in_specs,
                out_specs=out_specs,
                scratch_shapes=[pltpu.VMEM((Np, D), jnp.bfloat16)]),
            compiler_params=pltpu.CompilerParams(
                dimension_semantics=("arbitrary",),
                vmem_limit_bytes=vmem_limit),
            cost_estimate=pl.CostEstimate(
                flops=flops, transcendentals=L * D,
                bytes_accessed=bytes_accessed),
        )(*operands)

    try:
        feat_p, pred_p = build_and_run(single_buffer=True)
    except Exception:
        # Fallback if this jax build rejects Buffered(1) on constant inputs.
        feat_p, pred_p = build_and_run(single_buffer=False)

    # strip graph padding
    return feat_p[:num_graphs, :feat_dim], pred_p[:num_graphs, :out_dim]


# ----------------------------------------------------------------------------
if __name__ == "__main__":
    NUM_LAYER = 5
    EMB_DIM = 32
    FEAT_DIM = 64
    OUT_DIM = 2        # task='classification'
    N_NODES = 16
    N_EDGES = 24
    N_GRAPHS = 2

    key = jax.random.PRNGKey(0)
    k_x1, k_x2, k_ei, k_e1, k_e2, k_params = jax.random.split(key, 6)

    # data.x : [N, 2] (atom type, chirality tag)
    x = jnp.stack([
        jax.random.randint(k_x1, (N_NODES,), 0, NUM_ATOM_TYPE),
        jax.random.randint(k_x2, (N_NODES,), 0, NUM_CHIRALITY_TAG),
    ], axis=1).astype(jnp.int32)

    # data.edge_index : [2, E]
    edge_index = jax.random.randint(k_ei, (2, N_EDGES), 0, N_NODES).astype(jnp.int32)

    # data.edge_attr : [E, 2] (bond type, bond direction)
    edge_attr = jnp.stack([
        jax.random.randint(k_e1, (N_EDGES,), 0, NUM_BOND_TYPE - 1),
        jax.random.randint(k_e2, (N_EDGES,), 0, NUM_BOND_DIRECTION),
    ], axis=1).astype(jnp.int32)

    # data.batch : first half of nodes -> graph 0, second half -> graph 1
    batch = jnp.concatenate([
        jnp.zeros((N_NODES // 2,), jnp.int32),
        jnp.ones((N_NODES - N_NODES // 2,), jnp.int32),
    ])

    params = init_params(k_params, NUM_LAYER, EMB_DIM, FEAT_DIM, OUT_DIM)

    feat, pred = ginet_forward(params, x, edge_index, edge_attr, batch,
                               N_GRAPHS, NUM_LAYER, EMB_DIM, FEAT_DIM, OUT_DIM)
    jax.block_until_ready((feat, pred))

    assert feat.shape == (N_GRAPHS, FEAT_DIM)
    assert pred.shape == (N_GRAPHS, OUT_DIM)
    assert jnp.all(jnp.isfinite(feat)) and jnp.all(jnp.isfinite(pred))
    print("KERNEL_OK")
</pallas_src>

<mosaic_0001>
module attributes {stable_mosaic.version = 11 : i64} {
  func.func @ginet_fused_kernel(%arg0: i32, %arg1: memref<16x32xbf16, #tpu.memory_space<vmem>>, %arg2: memref<16x16xbf16, #tpu.memory_space<vmem>>, %arg3: memref<16x8xbf16, #tpu.memory_space<vmem>>, %arg4: memref<1x16xf32, #tpu.memory_space<vmem>>, %arg5: memref<1x8x32xbf16, #tpu.memory_space<vmem>>, %arg6: memref<1x32x64xbf16, #tpu.memory_space<vmem>>, %arg7: memref<1x1x64xf32, #tpu.memory_space<vmem>>, %arg8: memref<1x64x32xbf16, #tpu.memory_space<vmem>>, %arg9: memref<1x1x32xf32, #tpu.memory_space<vmem>>, %arg10: memref<1x1x32xf32, #tpu.memory_space<vmem>>, %arg11: memref<1x1x32xf32, #tpu.memory_space<vmem>>, %arg12: memref<8x16xf32, #tpu.memory_space<vmem>>, %arg13: memref<32x64xbf16, #tpu.memory_space<vmem>>, %arg14: memref<1x64xf32, #tpu.memory_space<vmem>>, %arg15: memref<64x32xbf16, #tpu.memory_space<vmem>>, %arg16: memref<1x32xf32, #tpu.memory_space<vmem>>, %arg17: memref<32x32xbf16, #tpu.memory_space<vmem>>, %arg18: memref<1x32xf32, #tpu.memory_space<vmem>>, %arg19: memref<32x2xbf16, #tpu.memory_space<vmem>>, %arg20: memref<1x2xf32, #tpu.memory_space<vmem>>, %arg21: memref<8x64xf32, #tpu.memory_space<vmem>>, %arg22: memref<8x2xf32, #tpu.memory_space<vmem>>, %arg23: memref<16x32xbf16, #tpu.memory_space<vmem>>) attributes {dimension_semantics = [#tpu.dimension_semantics<arbitrary>], iteration_bounds = array<i64: 5>, scalar_prefetch = 0 : i64, scratch_operands = 1 : i64, tpu.core_type = #tpu.core_type<tc>, window_params = [{pipeline_mode = #tpu.pipeline_mode<synchronous>, transform_indices = @transform_0, window_bounds = array<i64: 16, 32>}, {pipeline_mode = #tpu.pipeline_mode<synchronous>, transform_indices = @transform_1, window_bounds = array<i64: 16, 16>}, {pipeline_mode = #tpu.pipeline_mode<synchronous>, transform_indices = @transform_2, window_bounds = array<i64: 16, 8>}, {pipeline_mode = #tpu.pipeline_mode<synchronous>, transform_indices = @transform_3, window_bounds = array<i64: 1, 16>}, {transform_indices = @transform_4, window_bounds = array<i64: 1, 8, 32>}, {transform_indices = @transform_5, window_bounds = array<i64: 1, 32, 64>}, {transform_indices = @transform_6, window_bounds = array<i64: 1, 1, 64>}, {transform_indices = @transform_7, window_bounds = array<i64: 1, 64, 32>}, {transform_indices = @transform_8, window_bounds = array<i64: 1, 1, 32>}, {transform_indices = @transform_9, window_bounds = array<i64: 1, 1, 32>}, {transform_indices = @transform_10, window_bounds = array<i64: 1, 1, 32>}, {pipeline_mode = #tpu.pipeline_mode<synchronous>, transform_indices = @transform_11, window_bounds = array<i64: 8, 16>}, {pipeline_mode = #tpu.pipeline_mode<synchronous>, transform_indices = @transform_12, window_bounds = array<i64: 32, 64>}, {pipeline_mode = #tpu.pipeline_mode<synchronous>, transform_indices = @transform_13, window_bounds = array<i64: 1, 64>}, {pipeline_mode = #tpu.pipeline_mode<synchronous>, transform_indices = @transform_14, window_bounds = array<i64: 64, 32>}, {pipeline_mode = #tpu.pipeline_mode<synchronous>, transform_indices = @transform_15, window_bounds = array<i64: 1, 32>}, {pipeline_mode = #tpu.pipeline_mode<synchronous>, transform_indices = @transform_16, window_bounds = array<i64: 32, 32>}, {pipeline_mode = #tpu.pipeline_mode<synchronous>, transform_indices = @transform_17, window_bounds = array<i64: 1, 32>}, {pipeline_mode = #tpu.pipeline_mode<synchronous>, transform_indices = @transform_18, window_bounds = array<i64: 32, 2>}, {pipeline_mode = #tpu.pipeline_mode<synchronous>, transform_indices = @transform_19, window_bounds = array<i64: 1, 2>}, {pipeline_mode = #tpu.pipeline_mode<synchronous>, transform_indices = @transform_20, window_bounds = array<i64: 8, 64>}, {pipeline_mode = #tpu.pipeline_mode<synchronous>, transform_indices = @transform_21, window_bounds = array<i64: 8, 2>}]} {
    %c0_i32 = arith.constant 0 : i32
    %0 = arith.cmpi eq, %arg0, %c0_i32 : i32
    %1 = arith.extui %0 : i1 to i32
    %c0_i32_0 = arith.constant 0 : i32
    %2 = arith.cmpi ne, %1, %c0_i32_0 : i32
    scf.if %2 {
      %c0_42 = arith.constant 0 : index
      %c0_43 = arith.constant 0 : index
      %59 = vector.load %arg1[%c0_42, %c0_43] : memref<16x32xbf16, #tpu.memory_space<vmem>>, vector<16x32xbf16>
      %c0_44 = arith.constant 0 : index
      %c0_45 = arith.constant 0 : index
      %60 = vector.load %arg23[%c0_44, %c0_45] : memref<16x32xbf16, #tpu.memory_space<vmem>>, vector<16x32xbf16>
      tpu.vector_store %arg23[%c0_44, %c0_45], %59 {strides = array<i32>} : memref<16x32xbf16, #tpu.memory_space<vmem>>, vector<16x32xbf16>,
    } else {
    }
    %c0 = arith.constant 0 : index
    %c0_1 = arith.constant 0 : index
    %3 = vector.load %arg23[%c0, %c0_1] : memref<16x32xbf16, #tpu.memory_space<vmem>>, vector<16x32xbf16>
    %c0_2 = arith.constant 0 : index
    %c0_3 = arith.constant 0 : index
    %4 = vector.load %arg2[%c0_2, %c0_3] : memref<16x16xbf16, #tpu.memory_space<vmem>>, vector<16x16xbf16>
    %cst = arith.constant dense<0.000000e+00> : vector<16x32xf32>
    %5 = tpu.matmul %4, %3, %cst {dimension_numbers = #tpu.dot_dimension_numbers<[1], [0], [0], [1], [0, 0, 1, 1], [], []>} : vector<16x16xbf16>, vector<16x32xbf16>, vector<16x32xf32> -> vector<16x32xf32>
    %c0_4 = arith.constant 0 : index
    %c0_5 = arith.constant 0 : index
    %6 = vector.load %arg3[%c0_4, %c0_5] : memref<16x8xbf16, #tpu.memory_space<vmem>>, vector<16x8xbf16>
    %c0_6 = arith.constant 0 : index
    %c0_7 = arith.constant 0 : index
    %c0_8 = arith.constant 0 : index
    %7 = vector.load %arg5[%c0_6, %c0_7, %c0_8] : memref<1x8x32xbf16, #tpu.memory_space<vmem>>, vector<1x8x32xbf16>
    %8 = vector.shape_cast %7 : vector<1x8x32xbf16> to vector<8x32xbf16>
    %cst_9 = arith.constant dense<0.000000e+00> : vector<16x32xf32>
    %9 = tpu.matmul %6, %8, %cst_9 {dimension_numbers = #tpu.dot_dimension_numbers<[1], [0], [0], [1], [0, 0, 1, 1], [], []>} : vector<16x8xbf16>, vector<8x32xbf16>, vector<16x32xf32> -> vector<16x32xf32>
    %10 = arith.addf %5, %9 : vector<16x32xf32>
    %11 = arith.truncf %10 : vector<16x32xf32> to vector<16x32xbf16>
    %c0_10 = arith.constant 0 : index
    %c0_11 = arith.constant 0 : index
    %c0_12 = arith.constant 0 : index
    %12 = vector.load %arg6[%c0_10, %c0_11, %c0_12] : memref<1x32x64xbf16, #tpu.memory_space<vmem>>, vector<1x32x64xbf16>
    %13 = vector.shape_cast %12 : vector<1x32x64xbf16> to vector<32x64xbf16>
    %cst_13 = arith.constant dense<0.000000e+00> : vector<16x64xf32>
    %14 = tpu.matmul %11, %13, %cst_13 {dimension_numbers = #tpu.dot_dimension_numbers<[1], [0], [0], [1], [0, 0, 1, 1], [], []>} : vector<16x32xbf16>, vector<32x64xbf16>, vector<16x64xf32> -> vector<16x64xf32>
    %c0_14 = arith.constant 0 : index
    %c0_15 = arith.constant 0 : index
    %c0_16 = arith.constant 0 : index
    %15 = vector.load %arg7[%c0_14, %c0_15, %c0_16] : memref<1x1x64xf32, #tpu.memory_space<vmem>>, vector<1x1x64xf32>
    %16 = vector.shape_cast %15 : vector<1x1x64xf32> to vector<1x64xf32>
    %17 = vector.broadcast %16 : vector<1x64xf32> to vector<16x64xf32>
    %18 = arith.addf %14, %17 : vector<16x64xf32>
    %cst_17 = arith.constant 0.000000e+00 : f32
    %19 = vector.broadcast %cst_17 : f32 to vector<16x64xf32>
    %20 = arith.maximumf %18, %19 : vector<16x64xf32>
    %21 = arith.truncf %20 : vector<16x64xf32> to vector<16x64xbf16>
    %c0_18 = arith.constant 0 : index
    %c0_19 = arith.constant 0 : index
    %c0_20 = arith.constant 0 : index
    %22 = vector.load %arg8[%c0_18, %c0_19, %c0_20] : memref<1x64x32xbf16, #tpu.memory_space<vmem>>, vector<1x64x32xbf16>
    %23 = vector.shape_cast %22 : vector<1x64x32xbf16> to vector<64x32xbf16>
    %cst_21 = arith.constant dense<0.000000e+00> : vector<16x32xf32>
    %24 = tpu.matmul %21, %23, %cst_21 {dimension_numbers = #tpu.dot_dimension_numbers<[1], [0], [0], [1], [0, 0, 1, 1], [], []>} : vector<16x64xbf16>, vector<64x32xbf16>, vector<16x32xf32> -> vector<16x32xf32>
    %c0_22 = arith.constant 0 : index
    %c0_23 = arith.constant 0 : index
    %c0_24 = arith.constant 0 : index
    %25 = vector.load %arg9[%c0_22, %c0_23, %c0_24] : memref<1x1x32xf32, #tpu.memory_space<vmem>>, vector<1x1x32xf32>
    %26 = vector.shape_cast %25 : vector<1x1x32xf32> to vector<1x32xf32>
    %27 = vector.broadcast %26 : vector<1x32xf32> to vector<16x32xf32>
    %28 = arith.addf %24, %27 : vector<16x32xf32>
    %c0_25 = arith.constant 0 : index
    %c0_26 = arith.constant 0 : index
    %29 = vector.load %arg4[%c0_25, %c0_26] : memref<1x16xf32, #tpu.memory_space<vmem>>, vector<1x16xf32>
    %cst_27 = arith.constant dense<0.000000e+00> : vector<1x32xf32>
    %30 = tpu.matmul %29, %28, %cst_27 {dimension_numbers = #tpu.dot_dimension_numbers<[1], [0], [0], [1], [0, 0, 1, 1], [], []>} : vector<1x16xf32>, vector<16x32xf32>, vector<1x32xf32> -> vector<1x32xf32>
    %c0_28 = arith.constant 0 : index
    %c0_29 = arith.constant 0 : index
    %31 = vector.load %arg4[%c0_28, %c0_29] : memref<1x16xf32, #tpu.memory_space<vmem>>, vector<1x16xf32>
    %32 = arith.mulf %28, %28 : vector<16x32xf32>
    %cst_30 = arith.constant dense<0.000000e+00> : vector<1x32xf32>
    %33 = tpu.matmul %31, %32, %cst_30 {dimension_numbers = #tpu.dot_dimension_numbers<[1], [0], [0], [1], [0, 0, 1, 1], [], []>} : vector<1x16xf32>, vector<16x32xf32>, vector<1x32xf32> -> vector<1x32xf32>
    %34 = arith.mulf %30, %30 : vector<1x32xf32>
    %35 = arith.subf %33, %34 : vector<1x32xf32>
    %cst_31 = arith.constant 0.000000e+00 : f32
    %36 = vector.broadcast %cst_31 : f32 to vector<1x32xf32>
    %37 = arith.maximumf %35, %36 : vector<1x32xf32>
    %c0_32 = arith.constant 0 : index
    %c0_33 = arith.constant 0 : index
    %c0_34 = arith.constant 0 : index
    %38 = vector.load %arg10[%c0_32, %c0_33, %c0_34] : memref<1x1x32xf32, #tpu.memory_space<vmem>>, vector<1x1x32xf32>
    %39 = vector.shape_cast %38 : vector<1x1x32xf32> to vector<1x32xf32>
    %40 = vector.broadcast %30 : vector<1x32xf32> to vector<16x32xf32>
    %41 = arith.subf %28, %40 : vector<16x32xf32>
    %42 = vector.broadcast %39 : vector<1x32xf32> to vector<16x32xf32>
    %43 = arith.mulf %42, %41 : vector<16x32xf32>
    %cst_35 = arith.constant 9.99999974E-6 : f32
    %44 = vector.broadcast %cst_35 : f32 to vector<1x32xf32>
    %45 = arith.addf %37, %44 : vector<1x32xf32>
    %46 = math.rsqrt %45 : vector<1x32xf32>
    %47 = vector.broadcast %46 : vector<1x32xf32> to vector<16x32xf32>
    %48 = arith.mulf %43, %47 : vector<16x32xf32>
    %c0_36 = arith.constant 0 : index
    %c0_37 = arith.constant 0 : index
    %c0_38 = arith.constant 0 : index
    %49 = vector.load %arg11[%c0_36, %c0_37, %c0_38] : memref<1x1x32xf32, #tpu.memory_space<vmem>>, vector<1x1x32xf32>
    %50 = vector.shape_cast %49 : vector<1x1x32xf32> to vector<1x32xf32>
    %51 = vector.broadcast %50 : vector<1x32xf32> to vector<16x32xf32>
    %52 = arith.addf %48, %51 : vector<16x32xf32>
    %c4_i32 = arith.constant 4 : i32
    %53 = arith.cmpi slt, %arg0, %c4_i32 : i32
    %54 = arith.extui %53 : i1 to i32
    %c0_i32_39 = arith.constant 0 : i32
    %55 = arith.cmpi ne, %54, %c0_i32_39 : i32
    scf.if %55 {
      %cst_42 = arith.constant 0.000000e+00 : f32
      %59 = vector.broadcast %cst_42 : f32 to vector<16x32xf32>
      %60 = arith.maximumf %52, %59 : vector<16x32xf32>
      %61 = arith.truncf %60 : vector<16x32xf32> to vector<16x32xbf16>
      %c0_43 = arith.constant 0 : index
      %c0_44 = arith.constant 0 : index
      %62 = vector.load %arg23[%c0_43, %c0_44] : memref<16x32xbf16, #tpu.memory_space<vmem>>, vector<16x32xbf16>
      tpu.vector_store %arg23[%c0_43, %c0_44], %61 {strides = array<i32>} : memref<16x32xbf16, #tpu.memory_space<vmem>>, vector<16x32xbf16>,
    } else {
    }
    %c4_i32_40 = arith.constant 4 : i32
    %56 = arith.cmpi eq, %arg0, %c4_i32_40 : i32
    %57 = arith.extui %56 : i1 to i32
    %c0_i32_41 = arith.constant 0 : i32
    %58 = arith.cmpi ne, %57, %c0_i32_41 : i32
    scf.if %58 {
      %c0_42 = arith.constant 0 : index
      %c0_43 = arith.constant 0 : index
      %59 = vector.load %arg12[%c0_42, %c0_43] : memref<8x16xf32, #tpu.memory_space<vmem>>, vector<8x16xf32>
      %cst_44 = arith.constant dense<0.000000e+00> : vector<8x32xf32>
      %60 = tpu.matmul %59, %52, %cst_44 {dimension_numbers = #tpu.dot_dimension_numbers<[1], [0], [0], [1], [0, 0, 1, 1], [], []>} : vector<8x16xf32>, vector<16x32xf32>, vector<8x32xf32> -> vector<8x32xf32>
      %61 = arith.truncf %60 : vector<8x32xf32> to vector<8x32xbf16>
      %c0_45 = arith.constant 0 : index
      %c0_46 = arith.constant 0 : index
      %62 = vector.load %arg13[%c0_45, %c0_46] : memref<32x64xbf16, #tpu.memory_space<vmem>>, vector<32x64xbf16>
      %cst_47 = arith.constant dense<0.000000e+00> : vector<8x64xf32>
      %63 = tpu.matmul %61, %62, %cst_47 {dimension_numbers = #tpu.dot_dimension_numbers<[1], [0], [0], [1], [0, 0, 1, 1], [], []>} : vector<8x32xbf16>, vector<32x64xbf16>, vector<8x64xf32> -> vector<8x64xf32>
      %c0_48 = arith.constant 0 : index
      %c0_49 = arith.constant 0 : index
      %64 = vector.load %arg14[%c0_48, %c0_49] : memref<1x64xf32, #tpu.memory_space<vmem>>, vector<1x64xf32>
      %65 = vector.broadcast %64 : vector<1x64xf32> to vector<8x64xf32>
      %66 = arith.addf %63, %65 : vector<8x64xf32>
      %67 = arith.truncf %66 : vector<8x64xf32> to vector<8x64xbf16>
      %c0_50 = arith.constant 0 : index
      %c0_51 = arith.constant 0 : index
      %68 = vector.load %arg15[%c0_50, %c0_51] : memref<64x32xbf16, #tpu.memory_space<vmem>>, vector<64x32xbf16>
      %cst_52 = arith.constant dense<0.000000e+00> : vector<8x32xf32>
      %69 = tpu.matmul %67, %68, %cst_52 {dimension_numbers = #tpu.dot_dimension_numbers<[1], [0], [0], [1], [0, 0, 1, 1], [], []>} : vector<8x64xbf16>, vector<64x32xbf16>, vector<8x32xf32> -> vector<8x32xf32>
      %c0_53 = arith.constant 0 : index
      %c0_54 = arith.constant 0 : index
      %70 = vector.load %arg16[%c0_53, %c0_54] : memref<1x32xf32, #tpu.memory_space<vmem>>, vector<1x32xf32>
      %71 = vector.broadcast %70 : vector<1x32xf32> to vector<8x32xf32>
      %72 = arith.addf %69, %71 : vector<8x32xf32>
      %cst_55 = arith.constant 0.000000e+00 : f32
      %73 = vector.broadcast %cst_55 : f32 to vector<8x32xf32>
      %74 = arith.maximumf %72, %73 : vector<8x32xf32>
      %75 = arith.truncf %74 : vector<8x32xf32> to vector<8x32xbf16>
      %c0_56 = arith.constant 0 : index
      %c0_57 = arith.constant 0 : index
      %76 = vector.load %arg17[%c0_56, %c0_57] : memref<32x32xbf16, #tpu.memory_space<vmem>>, vector<32x32xbf16>
      %cst_58 = arith.constant dense<0.000000e+00> : vector<8x32xf32>
      %77 = tpu.matmul %75, %76, %cst_58 {dimension_numbers = #tpu.dot_dimension_numbers<[1], [0], [0], [1], [0, 0, 1, 1], [], []>} : vector<8x32xbf16>, vector<32x32xbf16>, vector<8x32xf32> -> vector<8x32xf32>
      %c0_59 = arith.constant 0 : index
      %c0_60 = arith.constant 0 : index
      %78 = vector.load %arg18[%c0_59, %c0_60] : memref<1x32xf32, #tpu.memory_space<vmem>>, vector<1x32xf32>
      %79 = vector.broadcast %78 : vector<1x32xf32> to vector<8x32xf32>
      %80 = arith.addf %77, %79 : vector<8x32xf32>
      %cst_61 = arith.constant 0.000000e+00 : f32
      %81 = vector.broadcast %cst_61 : f32 to vector<8x32xf32>
      %82 = arith.maximumf %80, %81 : vector<8x32xf32>
      %83 = arith.truncf %82 : vector<8x32xf32> to vector<8x32xbf16>
      %c0_62 = arith.constant 0 : index
      %c0_63 = arith.constant 0 : index
      %84 = vector.load %arg19[%c0_62, %c0_63] : memref<32x2xbf16, #tpu.memory_space<vmem>>, vector<32x2xbf16>
      %cst_64 = arith.constant dense<0.000000e+00> : vector<8x2xf32>
      %85 = tpu.matmul %83, %84, %cst_64 {dimension_numbers = #tpu.dot_dimension_numbers<[1], [0], [0], [1], [0, 0, 1, 1], [], []>} : vector<8x32xbf16>, vector<32x2xbf16>, vector<8x2xf32> -> vector<8x2xf32>
      %c0_65 = arith.constant 0 : index
      %c0_66 = arith.constant 0 : index
      %86 = vector.load %arg20[%c0_65, %c0_66] : memref<1x2xf32, #tpu.memory_space<vmem>>, vector<1x2xf32>
      %87 = vector.broadcast %86 : vector<1x2xf32> to vector<8x2xf32>
      %88 = arith.addf %85, %87 : vector<8x2xf32>
      %c0_67 = arith.constant 0 : index
      %c0_68 = arith.constant 0 : index
      %89 = vector.load %arg21[%c0_67, %c0_68] : memref<8x64xf32, #tpu.memory_space<vmem>>, vector<8x64xf32>
      tpu.vector_store %arg21[%c0_67, %c0_68], %66 {strides = array<i32>} : memref<8x64xf32, #tpu.memory_space<vmem>>, vector<8x64xf32>,
      %c0_69 = arith.constant 0 : index
      %c0_70 = arith.constant 0 : index
      %90 = vector.load %arg22[%c0_69, %c0_70] : memref<8x2xf32, #tpu.memory_space<vmem>>, vector<8x2xf32>
      tpu.vector_store %arg22[%c0_69, %c0_70], %88 {strides = array<i32>} : memref<8x2xf32, #tpu.memory_space<vmem>>, vector<8x2xf32>,
    } else {
    }
    return
  }
  func.func @transform_0(%arg0: i32) -> (i32, i32) {
    %c0_i32 = arith.constant 0 : i32
    %c0_i32_0 = arith.constant 0 : i32
    %c0_i32_1 = arith.constant 0 : i32
    return %c0_i32, %c0_i32_0 : i32, i32
  }
  func.func @transform_1(%arg0: i32) -> (i32, i32) {
    %c0_i32 = arith.constant 0 : i32
    %c0_i32_0 = arith.constant 0 : i32
    %c0_i32_1 = arith.constant 0 : i32
    return %c0_i32, %c0_i32_0 : i32, i32
  }
  func.func @transform_2(%arg0: i32) -> (i32, i32) {
    %c0_i32 = arith.constant 0 : i32
    %c0_i32_0 = arith.constant 0 : i32
    %c0_i32_1 = arith.constant 0 : i32
    return %c0_i32, %c0_i32_0 : i32, i32
  }
  func.func @transform_3(%arg0: i32) -> (i32, i32) {
    %c0_i32 = arith.constant 0 : i32
    %c0_i32_0 = arith.constant 0 : i32
    %c0_i32_1 = arith.constant 0 : i32
    return %c0_i32, %c0_i32_0 : i32, i32
  }
  func.func @transform_4(%arg0: i32) -> (i32, i32, i32) {
    %c0_i32 = arith.constant 0 : i32
    %c0_i32_0 = arith.constant 0 : i32
    %c0_i32_1 = arith.constant 0 : i32
    return %arg0, %c0_i32, %c0_i32_0 : i32, i32, i32
  }
  func.func @transform_5(%arg0: i32) -> (i32, i32, i32) {
    %c0_i32 = arith.constant 0 : i32
    %c0_i32_0 = arith.constant 0 : i32
    %c0_i32_1 = arith.constant 0 : i32
    return %arg0, %c0_i32, %c0_i32_0 : i32, i32, i32
  }
  func.func @transform_6(%arg0: i32) -> (i32, i32, i32) {
    %c0_i32 = arith.constant 0 : i32
    %c0_i32_0 = arith.constant 0 : i32
    %c0_i32_1 = arith.constant 0 : i32
    return %arg0, %c0_i32, %c0_i32_0 : i32, i32, i32
  }
  func.func @transform_7(%arg0: i32) -> (i32, i32, i32) {
    %c0_i32 = arith.constant 0 : i32
    %c0_i32_0 = arith.constant 0 : i32
    %c0_i32_1 = arith.constant 0 : i32
    return %arg0, %c0_i32, %c0_i32_0 : i32, i32, i32
  }
  func.func @transform_8(%arg0: i32) -> (i32, i32, i32) {
    %c0_i32 = arith.constant 0 : i32
    %c0_i32_0 = arith.constant 0 : i32
    %c0_i32_1 = arith.constant 0 : i32
    return %arg0, %c0_i32, %c0_i32_0 : i32, i32, i32
  }
  func.func @transform_9(%arg0: i32) -> (i32, i32, i32) {
    %c0_i32 = arith.constant 0 : i32
    %c0_i32_0 = arith.constant 0 : i32
    %c0_i32_1 = arith.constant 0 : i32
    return %arg0, %c0_i32, %c0_i32_0 : i32, i32, i32
  }
  func.func @transform_10(%arg0: i32) -> (i32, i32, i32) {
    %c0_i32 = arith.constant 0 : i32
    %c0_i32_0 = arith.constant 0 : i32
    %c0_i32_1 = arith.constant 0 : i32
    return %arg0, %c0_i32, %c0_i32_0 : i32, i32, i32
  }
  func.func @transform_11(%arg0: i32) -> (i32, i32) {
    %c0_i32 = arith.constant 0 : i32
    %c0_i32_0 = arith.constant 0 : i32
    %c0_i32_1 = arith.constant 0 : i32
    return %c0_i32, %c0_i32_0 : i32, i32
  }
  func.func @transform_12(%arg0: i32) -> (i32, i32) {
    %c0_i32 = arith.constant 0 : i32
    %c0_i32_0 = arith.constant 0 : i32
    %c0_i32_1 = arith.constant 0 : i32
    return %c0_i32, %c0_i32_0 : i32, i32
  }
  func.func @transform_13(%arg0: i32) -> (i32, i32) {
    %c0_i32 = arith.constant 0 : i32
    %c0_i32_0 = arith.constant 0 : i32
    %c0_i32_1 = arith.constant 0 : i32
    return %c0_i32, %c0_i32_0 : i32, i32
  }
  func.func @transform_14(%arg0: i32) -> (i32, i32) {
    %c0_i32 = arith.constant 0 : i32
    %c0_i32_0 = arith.constant 0 : i32
    %c0_i32_1 = arith.constant 0 : i32
    return %c0_i32, %c0_i32_0 : i32, i32
  }
  func.func @transform_15(%arg0: i32) -> (i32, i32) {
    %c0_i32 = arith.constant 0 : i32
    %c0_i32_0 = arith.constant 0 : i32
    %c0_i32_1 = arith.constant 0 : i32
    return %c0_i32, %c0_i32_0 : i32, i32
  }
  func.func @transform_16(%arg0: i32) -> (i32, i32) {
    %c0_i32 = arith.constant 0 : i32
    %c0_i32_0 = arith.constant 0 : i32
    %c0_i32_1 = arith.constant 0 : i32
    return %c0_i32, %c0_i32_0 : i32, i32
  }
  func.func @transform_17(%arg0: i32) -> (i32, i32) {
    %c0_i32 = arith.constant 0 : i32
    %c0_i32_0 = arith.constant 0 : i32
    %c0_i32_1 = arith.constant 0 : i32
    return %c0_i32, %c0_i32_0 : i32, i32
  }
  func.func @transform_18(%arg0: i32) -> (i32, i32) {
    %c0_i32 = arith.constant 0 : i32
    %c0_i32_0 = arith.constant 0 : i32
    %c0_i32_1 = arith.constant 0 : i32
    return %c0_i32, %c0_i32_0 : i32, i32
  }
  func.func @transform_19(%arg0: i32) -> (i32, i32) {
    %c0_i32 = arith.constant 0 : i32
    %c0_i32_0 = arith.constant 0 : i32
    %c0_i32_1 = arith.constant 0 : i32
    return %c0_i32, %c0_i32_0 : i32, i32
  }
  func.func @transform_20(%arg0: i32) -> (i32, i32) {
    %c0_i32 = arith.constant 0 : i32
    %c0_i32_0 = arith.constant 0 : i32
    %c0_i32_1 = arith.constant 0 : i32
    return %c0_i32, %c0_i32_0 : i32, i32
  }
  func.func @transform_21(%arg0: i32) -> (i32, i32) {
    %c0_i32 = arith.constant 0 : i32
    %c0_i32_0 = arith.constant 0 : i32
    %c0_i32_1 = arith.constant 0 : i32
    return %c0_i32, %c0_i32_0 : i32, i32
  }
}

module attributes {stable_mosaic.version = 11 : i64} {
  func.func @ginet_fused_kernel(%arg0: i32, %arg1: memref<16x32xbf16, #tpu.memory_space<vmem>>, %arg2: memref<16x16xbf16, #tpu.memory_space<vmem>>, %arg3: memref<16x8xbf16, #tpu.memory_space<vmem>>, %arg4: memref<1x16xf32, #tpu.memory_space<vmem>>, %arg5: memref<1x8x32xbf16, #tpu.memory_space<vmem>>, %arg6: memref<1x32x64xbf16, #tpu.memory_space<vmem>>, %arg7: memref<1x1x64xf32, #tpu.memory_space<vmem>>, %arg8: memref<1x64x32xbf16, #tpu.memory_space<vmem>>, %arg9: memref<1x1x32xf32, #tpu.memory_space<vmem>>, %arg10: memref<1x1x32xf32, #tpu.memory_space<vmem>>, %arg11: memref<1x1x32xf32, #tpu.memory_space<vmem>>, %arg12: memref<8x16xf32, #tpu.memory_space<vmem>>, %arg13: memref<32x64xbf16, #tpu.memory_space<vmem>>, %arg14: memref<1x64xf32, #tpu.memory_space<vmem>>, %arg15: memref<64x32xbf16, #tpu.memory_space<vmem>>, %arg16: memref<1x32xf32, #tpu.memory_space<vmem>>, %arg17: memref<32x32xbf16, #tpu.memory_space<vmem>>, %arg18: memref<1x32xf32, #tpu.memory_space<vmem>>, %arg19: memref<32x2xbf16, #tpu.memory_space<vmem>>, %arg20: memref<1x2xf32, #tpu.memory_space<vmem>>, %arg21: memref<8x64xf32, #tpu.memory_space<vmem>>, %arg22: memref<8x2xf32, #tpu.memory_space<vmem>>, %arg23: memref<16x32xbf16, #tpu.memory_space<vmem>>) attributes {dimension_semantics = [#tpu.dimension_semantics<arbitrary>], iteration_bounds = array<i64: 5>, scalar_prefetch = 0 : i64, scratch_operands = 1 : i64, tpu.core_type = #tpu.core_type<tc>, window_params = [{pipeline_mode = #tpu.pipeline_mode<synchronous>, transform_indices = @transform_0, window_bounds = array<i64: 16, 32>}, {pipeline_mode = #tpu.pipeline_mode<synchronous>, transform_indices = @transform_1, window_bounds = array<i64: 16, 16>}, {pipeline_mode = #tpu.pipeline_mode<synchronous>, transform_indices = @transform_2, window_bounds = array<i64: 16, 8>}, {pipeline_mode = #tpu.pipeline_mode<synchronous>, transform_indices = @transform_3, window_bounds = array<i64: 1, 16>}, {transform_indices = @transform_4, window_bounds = array<i64: 1, 8, 32>}, {transform_indices = @transform_5, window_bounds = array<i64: 1, 32, 64>}, {transform_indices = @transform_6, window_bounds = array<i64: 1, 1, 64>}, {transform_indices = @transform_7, window_bounds = array<i64: 1, 64, 32>}, {transform_indices = @transform_8, window_bounds = array<i64: 1, 1, 32>}, {transform_indices = @transform_9, window_bounds = array<i64: 1, 1, 32>}, {transform_indices = @transform_10, window_bounds = array<i64: 1, 1, 32>}, {pipeline_mode = #tpu.pipeline_mode<synchronous>, transform_indices = @transform_11, window_bounds = array<i64: 8, 16>}, {pipeline_mode = #tpu.pipeline_mode<synchronous>, transform_indices = @transform_12, window_bounds = array<i64: 32, 64>}, {pipeline_mode = #tpu.pipeline_mode<synchronous>, transform_indices = @transform_13, window_bounds = array<i64: 1, 64>}, {pipeline_mode = #tpu.pipeline_mode<synchronous>, transform_indices = @transform_14, window_bounds = array<i64: 64, 32>}, {pipeline_mode = #tpu.pipeline_mode<synchronous>, transform_indices = @transform_15, window_bounds = array<i64: 1, 32>}, {pipeline_mode = #tpu.pipeline_mode<synchronous>, transform_indices = @transform_16, window_bounds = array<i64: 32, 32>}, {pipeline_mode = #tpu.pipeline_mode<synchronous>, transform_indices = @transform_17, window_bounds = array<i64: 1, 32>}, {pipeline_mode = #tpu.pipeline_mode<synchronous>, transform_indices = @transform_18, window_bounds = array<i64: 32, 2>}, {pipeline_mode = #tpu.pipeline_mode<synchronous>, transform_indices = @transform_19, window_bounds = array<i64: 1, 2>}, {pipeline_mode = #tpu.pipeline_mode<synchronous>, transform_indices = @transform_20, window_bounds = array<i64: 8, 64>}, {pipeline_mode = #tpu.pipeline_mode<synchronous>, transform_indices = @transform_21, window_bounds = array<i64: 8, 2>}]} {
    %c0_i32 = arith.constant 0 : i32
    %0 = arith.cmpi eq, %arg0, %c0_i32 : i32
    %1 = arith.extui %0 : i1 to i32
    %c0_i32_0 = arith.constant 0 : i32
    %2 = arith.cmpi ne, %1, %c0_i32_0 : i32
    scf.if %2 {
      %c0_42 = arith.constant 0 : index
      %c0_43 = arith.constant 0 : index
      %59 = vector.load %arg1[%c0_42, %c0_43] : memref<16x32xbf16, #tpu.memory_space<vmem>>, vector<16x32xbf16>
      %c0_44 = arith.constant 0 : index
      %c0_45 = arith.constant 0 : index
      %60 = vector.load %arg23[%c0_44, %c0_45] : memref<16x32xbf16, #tpu.memory_space<vmem>>, vector<16x32xbf16>
      tpu.vector_store %arg23[%c0_44, %c0_45], %59 {strides = array<i32>} : memref<16x32xbf16, #tpu.memory_space<vmem>>, vector<16x32xbf16>,
    } else {
    }
    %c0 = arith.constant 0 : index
    %c0_1 = arith.constant 0 : index
    %3 = vector.load %arg23[%c0, %c0_1] : memref<16x32xbf16, #tpu.memory_space<vmem>>, vector<16x32xbf16>
    %c0_2 = arith.constant 0 : index
    %c0_3 = arith.constant 0 : index
    %4 = vector.load %arg2[%c0_2, %c0_3] : memref<16x16xbf16, #tpu.memory_space<vmem>>, vector<16x16xbf16>
    %cst = arith.constant dense<0.000000e+00> : vector<16x32xf32>
    %5 = tpu.matmul %4, %3, %cst {dimension_numbers = #tpu.dot_dimension_numbers<[1], [0], [0], [1], [0, 0, 1, 1], [], []>} : vector<16x16xbf16>, vector<16x32xbf16>, vector<16x32xf32> -> vector<16x32xf32>
    %c0_4 = arith.constant 0 : index
    %c0_5 = arith.constant 0 : index
    %6 = vector.load %arg3[%c0_4, %c0_5] : memref<16x8xbf16, #tpu.memory_space<vmem>>, vector<16x8xbf16>
    %c0_6 = arith.constant 0 : index
    %c0_7 = arith.constant 0 : index
    %c0_8 = arith.constant 0 : index
    %7 = vector.load %arg5[%c0_6, %c0_7, %c0_8] : memref<1x8x32xbf16, #tpu.memory_space<vmem>>, vector<1x8x32xbf16>
    %8 = vector.shape_cast %7 : vector<1x8x32xbf16> to vector<8x32xbf16>
    %cst_9 = arith.constant dense<0.000000e+00> : vector<16x32xf32>
    %9 = tpu.matmul %6, %8, %cst_9 {dimension_numbers = #tpu.dot_dimension_numbers<[1], [0], [0], [1], [0, 0, 1, 1], [], []>} : vector<16x8xbf16>, vector<8x32xbf16>, vector<16x32xf32> -> vector<16x32xf32>
    %10 = arith.addf %5, %9 : vector<16x32xf32>
    %11 = arith.truncf %10 : vector<16x32xf32> to vector<16x32xbf16>
    %c0_10 = arith.constant 0 : index
    %c0_11 = arith.constant 0 : index
    %c0_12 = arith.constant 0 : index
    %12 = vector.load %arg6[%c0_10, %c0_11, %c0_12] : memref<1x32x64xbf16, #tpu.memory_space<vmem>>, vector<1x32x64xbf16>
    %13 = vector.shape_cast %12 : vector<1x32x64xbf16> to vector<32x64xbf16>
    %cst_13 = arith.constant dense<0.000000e+00> : vector<16x64xf32>
    %14 = tpu.matmul %11, %13, %cst_13 {dimension_numbers = #tpu.dot_dimension_numbers<[1], [0], [0], [1], [0, 0, 1, 1], [], []>} : vector<16x32xbf16>, vector<32x64xbf16>, vector<16x64xf32> -> vector<16x64xf32>
    %c0_14 = arith.constant 0 : index
    %c0_15 = arith.constant 0 : index
    %c0_16 = arith.constant 0 : index
    %15 = vector.load %arg7[%c0_14, %c0_15, %c0_16] : memref<1x1x64xf32, #tpu.memory_space<vmem>>, vector<1x1x64xf32>
    %16 = vector.shape_cast %15 : vector<1x1x64xf32> to vector<1x64xf32>
    %17 = vector.broadcast %16 : vector<1x64xf32> to vector<16x64xf32>
    %18 = arith.addf %14, %17 : vector<16x64xf32>
    %cst_17 = arith.constant 0.000000e+00 : f32
    %19 = vector.broadcast %cst_17 : f32 to vector<16x64xf32>
    %20 = arith.maximumf %18, %19 : vector<16x64xf32>
    %21 = arith.truncf %20 : vector<16x64xf32> to vector<16x64xbf16>
    %c0_18 = arith.constant 0 : index
    %c0_19 = arith.constant 0 : index
    %c0_20 = arith.constant 0 : index
    %22 = vector.load %arg8[%c0_18, %c0_19, %c0_20] : memref<1x64x32xbf16, #tpu.memory_space<vmem>>, vector<1x64x32xbf16>
    %23 = vector.shape_cast %22 : vector<1x64x32xbf16> to vector<64x32xbf16>
    %cst_21 = arith.constant dense<0.000000e+00> : vector<16x32xf32>
    %24 = tpu.matmul %21, %23, %cst_21 {dimension_numbers = #tpu.dot_dimension_numbers<[1], [0], [0], [1], [0, 0, 1, 1], [], []>} : vector<16x64xbf16>, vector<64x32xbf16>, vector<16x32xf32> -> vector<16x32xf32>
    %c0_22 = arith.constant 0 : index
    %c0_23 = arith.constant 0 : index
    %c0_24 = arith.constant 0 : index
    %25 = vector.load %arg9[%c0_22, %c0_23, %c0_24] : memref<1x1x32xf32, #tpu.memory_space<vmem>>, vector<1x1x32xf32>
    %26 = vector.shape_cast %25 : vector<1x1x32xf32> to vector<1x32xf32>
    %27 = vector.broadcast %26 : vector<1x32xf32> to vector<16x32xf32>
    %28 = arith.addf %24, %27 : vector<16x32xf32>
    %c0_25 = arith.constant 0 : index
    %c0_26 = arith.constant 0 : index
    %29 = vector.load %arg4[%c0_25, %c0_26] : memref<1x16xf32, #tpu.memory_space<vmem>>, vector<1x16xf32>
    %cst_27 = arith.constant dense<0.000000e+00> : vector<1x32xf32>
    %30 = tpu.matmul %29, %28, %cst_27 {dimension_numbers = #tpu.dot_dimension_numbers<[1], [0], [0], [1], [0, 0, 1, 1], [], []>} : vector<1x16xf32>, vector<16x32xf32>, vector<1x32xf32> -> vector<1x32xf32>
    %c0_28 = arith.constant 0 : index
    %c0_29 = arith.constant 0 : index
    %31 = vector.load %arg4[%c0_28, %c0_29] : memref<1x16xf32, #tpu.memory_space<vmem>>, vector<1x16xf32>
    %32 = arith.mulf %28, %28 : vector<16x32xf32>
    %cst_30 = arith.constant dense<0.000000e+00> : vector<1x32xf32>
    %33 = tpu.matmul %31, %32, %cst_30 {dimension_numbers = #tpu.dot_dimension_numbers<[1], [0], [0], [1], [0, 0, 1, 1], [], []>} : vector<1x16xf32>, vector<16x32xf32>, vector<1x32xf32> -> vector<1x32xf32>
    %34 = arith.mulf %30, %30 : vector<1x32xf32>
    %35 = arith.subf %33, %34 : vector<1x32xf32>
    %cst_31 = arith.constant 0.000000e+00 : f32
    %36 = vector.broadcast %cst_31 : f32 to vector<1x32xf32>
    %37 = arith.maximumf %35, %36 : vector<1x32xf32>
    %c0_32 = arith.constant 0 : index
    %c0_33 = arith.constant 0 : index
    %c0_34 = arith.constant 0 : index
    %38 = vector.load %arg10[%c0_32, %c0_33, %c0_34] : memref<1x1x32xf32, #tpu.memory_space<vmem>>, vector<1x1x32xf32>
    %39 = vector.shape_cast %38 : vector<1x1x32xf32> to vector<1x32xf32>
    %40 = vector.broadcast %30 : vector<1x32xf32> to vector<16x32xf32>
    %41 = arith.subf %28, %40 : vector<16x32xf32>
    %42 = vector.broadcast %39 : vector<1x32xf32> to vector<16x32xf32>
    %43 = arith.mulf %42, %41 : vector<16x32xf32>
    %cst_35 = arith.constant 9.99999974E-6 : f32
    %44 = vector.broadcast %cst_35 : f32 to vector<1x32xf32>
    %45 = arith.addf %37, %44 : vector<1x32xf32>
    %46 = math.rsqrt %45 : vector<1x32xf32>
    %47 = vector.broadcast %46 : vector<1x32xf32> to vector<16x32xf32>
    %48 = arith.mulf %43, %47 : vector<16x32xf32>
    %c0_36 = arith.constant 0 : index
    %c0_37 = arith.constant 0 : index
    %c0_38 = arith.constant 0 : index
    %49 = vector.load %arg11[%c0_36, %c0_37, %c0_38] : memref<1x1x32xf32, #tpu.memory_space<vmem>>, vector<1x1x32xf32>
    %50 = vector.shape_cast %49 : vector<1x1x32xf32> to vector<1x32xf32>
    %51 = vector.broadcast %50 : vector<1x32xf32> to vector<16x32xf32>
    %52 = arith.addf %48, %51 : vector<16x32xf32>
    %c4_i32 = arith.constant 4 : i32
    %53 = arith.cmpi slt, %arg0, %c4_i32 : i32
    %54 = arith.extui %53 : i1 to i32
    %c0_i32_39 = arith.constant 0 : i32
    %55 = arith.cmpi ne, %54, %c0_i32_39 : i32
    scf.if %55 {
      %cst_42 = arith.constant 0.000000e+00 : f32
      %59 = vector.broadcast %cst_42 : f32 to vector<16x32xf32>
      %60 = arith.maximumf %52, %59 : vector<16x32xf32>
      %61 = arith.truncf %60 : vector<16x32xf32> to vector<16x32xbf16>
      %c0_43 = arith.constant 0 : index
      %c0_44 = arith.constant 0 : index
      %62 = vector.load %arg23[%c0_43, %c0_44] : memref<16x32xbf16, #tpu.memory_space<vmem>>, vector<16x32xbf16>
      tpu.vector_store %arg23[%c0_43, %c0_44], %61 {strides = array<i32>} : memref<16x32xbf16, #tpu.memory_space<vmem>>, vector<16x32xbf16>,
    } else {
    }
    %c4_i32_40 = arith.constant 4 : i32
    %56 = arith.cmpi eq, %arg0, %c4_i32_40 : i32
    %57 = arith.extui %56 : i1 to i32
    %c0_i32_41 = arith.constant 0 : i32
    %58 = arith.cmpi ne, %57, %c0_i32_41 : i32
    scf.if %58 {
      %c0_42 = arith.constant 0 : index
      %c0_43 = arith.constant 0 : index
      %59 = vector.load %arg12[%c0_42, %c0_43] : memref<8x16xf32, #tpu.memory_space<vmem>>, vector<8x16xf32>
      %cst_44 = arith.constant dense<0.000000e+00> : vector<8x32xf32>
      %60 = tpu.matmul %59, %52, %cst_44 {dimension_numbers = #tpu.dot_dimension_numbers<[1], [0], [0], [1], [0, 0, 1, 1], [], []>} : vector<8x16xf32>, vector<16x32xf32>, vector<8x32xf32> -> vector<8x32xf32>
      %61 = arith.truncf %60 : vector<8x32xf32> to vector<8x32xbf16>
      %c0_45 = arith.constant 0 : index
      %c0_46 = arith.constant 0 : index
      %62 = vector.load %arg13[%c0_45, %c0_46] : memref<32x64xbf16, #tpu.memory_space<vmem>>, vector<32x64xbf16>
      %cst_47 = arith.constant dense<0.000000e+00> : vector<8x64xf32>
      %63 = tpu.matmul %61, %62, %cst_47 {dimension_numbers = #tpu.dot_dimension_numbers<[1], [0], [0], [1], [0, 0, 1, 1], [], []>} : vector<8x32xbf16>, vector<32x64xbf16>, vector<8x64xf32> -> vector<8x64xf32>
      %c0_48 = arith.constant 0 : index
      %c0_49 = arith.constant 0 : index
      %64 = vector.load %arg14[%c0_48, %c0_49] : memref<1x64xf32, #tpu.memory_space<vmem>>, vector<1x64xf32>
      %65 = vector.broadcast %64 : vector<1x64xf32> to vector<8x64xf32>
      %66 = arith.addf %63, %65 : vector<8x64xf32>
      %67 = arith.truncf %66 : vector<8x64xf32> to vector<8x64xbf16>
      %c0_50 = arith.constant 0 : index
      %c0_51 = arith.constant 0 : index
      %68 = vector.load %arg15[%c0_50, %c0_51] : memref<64x32xbf16, #tpu.memory_space<vmem>>, vector<64x32xbf16>
      %cst_52 = arith.constant dense<0.000000e+00> : vector<8x32xf32>
      %69 = tpu.matmul %67, %68, %cst_52 {dimension_numbers = #tpu.dot_dimension_numbers<[1], [0], [0], [1], [0, 0, 1, 1], [], []>} : vector<8x64xbf16>, vector<64x32xbf16>, vector<8x32xf32> -> vector<8x32xf32>
      %c0_53 = arith.constant 0 : index
      %c0_54 = arith.constant 0 : index
      %70 = vector.load %arg16[%c0_53, %c0_54] : memref<1x32xf32, #tpu.memory_space<vmem>>, vector<1x32xf32>
      %71 = vector.broadcast %70 : vector<1x32xf32> to vector<8x32xf32>
      %72 = arith.addf %69, %71 : vector<8x32xf32>
      %cst_55 = arith.constant 0.000000e+00 : f32
      %73 = vector.broadcast %cst_55 : f32 to vector<8x32xf32>
      %74 = arith.maximumf %72, %73 : vector<8x32xf32>
      %75 = arith.truncf %74 : vector<8x32xf32> to vector<8x32xbf16>
      %c0_56 = arith.constant 0 : index
      %c0_57 = arith.constant 0 : index
      %76 = vector.load %arg17[%c0_56, %c0_57] : memref<32x32xbf16, #tpu.memory_space<vmem>>, vector<32x32xbf16>
      %cst_58 = arith.constant dense<0.000000e+00> : vector<8x32xf32>
      %77 = tpu.matmul %75, %76, %cst_58 {dimension_numbers = #tpu.dot_dimension_numbers<[1], [0], [0], [1], [0, 0, 1, 1], [], []>} : vector<8x32xbf16>, vector<32x32xbf16>, vector<8x32xf32> -> vector<8x32xf32>
      %c0_59 = arith.constant 0 : index
      %c0_60 = arith.constant 0 : index
      %78 = vector.load %arg18[%c0_59, %c0_60] : memref<1x32xf32, #tpu.memory_space<vmem>>, vector<1x32xf32>
      %79 = vector.broadcast %78 : vector<1x32xf32> to vector<8x32xf32>
      %80 = arith.addf %77, %79 : vector<8x32xf32>
      %cst_61 = arith.constant 0.000000e+00 : f32
      %81 = vector.broadcast %cst_61 : f32 to vector<8x32xf32>
      %82 = arith.maximumf %80, %81 : vector<8x32xf32>
      %83 = arith.truncf %82 : vector<8x32xf32> to vector<8x32xbf16>
      %c0_62 = arith.constant 0 : index
      %c0_63 = arith.constant 0 : index
      %84 = vector.load %arg19[%c0_62, %c0_63] : memref<32x2xbf16, #tpu.memory_space<vmem>>, vector<32x2xbf16>
      %cst_64 = arith.constant dense<0.000000e+00> : vector<8x2xf32>
      %85 = tpu.matmul %83, %84, %cst_64 {dimension_numbers = #tpu.dot_dimension_numbers<[1], [0], [0], [1], [0, 0, 1, 1], [], []>} : vector<8x32xbf16>, vector<32x2xbf16>, vector<8x2xf32> -> vector<8x2xf32>
      %c0_65 = arith.constant 0 : index
      %c0_66 = arith.constant 0 : index
      %86 = vector.load %arg20[%c0_65, %c0_66] : memref<1x2xf32, #tpu.memory_space<vmem>>, vector<1x2xf32>
      %87 = vector.broadcast %86 : vector<1x2xf32> to vector<8x2xf32>
      %88 = arith.addf %85, %87 : vector<8x2xf32>
      %c0_67 = arith.constant 0 : index
      %c0_68 = arith.constant 0 : index
      %89 = vector.load %arg21[%c0_67, %c0_68] : memref<8x64xf32, #tpu.memory_space<vmem>>, vector<8x64xf32>
      tpu.vector_store %arg21[%c0_67, %c0_68], %66 {strides = array<i32>} : memref<8x64xf32, #tpu.memory_space<vmem>>, vector<8x64xf32>,
      %c0_69 = arith.constant 0 : index
      %c0_70 = arith.constant 0 : index
      %90 = vector.load %arg22[%c0_69, %c0_70] : memref<8x2xf32, #tpu.memory_space<vmem>>, vector<8x2xf32>
      tpu.vector_store %arg22[%c0_69, %c0_70], %88 {strides = array<i32>} : memref<8x2xf32, #tpu.memory_space<vmem>>, vector<8x2xf32>,
    } else {
    }
    return
  }
  func.func @transform_0(%arg0: i32) -> (i32, i32) {
    %c0_i32 = arith.constant 0 : i32
    %c0_i32_0 = arith.constant 0 : i32
    %c0_i32_1 = arith.constant 0 : i32
    return %c0_i32, %c0_i32_0 : i32, i32
  }
  func.func @transform_1(%arg0: i32) -> (i32, i32) {
    %c0_i32 = arith.constant 0 : i32
    %c0_i32_0 = arith.constant 0 : i32
    %c0_i32_1 = arith.constant 0 : i32
    return %c0_i32, %c0_i32_0 : i32, i32
  }
  func.func @transform_2(%arg0: i32) -> (i32, i32) {
    %c0_i32 = arith.constant 0 : i32
    %c0_i32_0 = arith.constant 0 : i32
    %c0_i32_1 = arith.constant 0 : i32
    return %c0_i32, %c0_i32_0 : i32, i32
  }
  func.func @transform_3(%arg0: i32) -> (i32, i32) {
    %c0_i32 = arith.constant 0 : i32
    %c0_i32_0 = arith.constant 0 : i32
    %c0_i32_1 = arith.constant 0 : i32
    return %c0_i32, %c0_i32_0 : i32, i32
  }
  func.func @transform_4(%arg0: i32) -> (i32, i32, i32) {
    %c0_i32 = arith.constant 0 : i32
    %c0_i32_0 = arith.constant 0 : i32
    %c0_i32_1 = arith.constant 0 : i32
    return %arg0, %c0_i32, %c0_i32_0 : i32, i32, i32
  }
  func.func @transform_5(%arg0: i32) -> (i32, i32, i32) {
    %c0_i32 = arith.constant 0 : i32
    %c0_i32_0 = arith.constant 0 : i32
    %c0_i32_1 = arith.constant 0 : i32
    return %arg0, %c0_i32, %c0_i32_0 : i32, i32, i32
  }
  func.func @transform_6(%arg0: i32) -> (i32, i32, i32) {
    %c0_i32 = arith.constant 0 : i32
    %c0_i32_0 = arith.constant 0 : i32
    %c0_i32_1 = arith.constant 0 : i32
    return %arg0, %c0_i32, %c0_i32_0 : i32, i32, i32
  }
  func.func @transform_7(%arg0: i32) -> (i32, i32, i32) {
    %c0_i32 = arith.constant 0 : i32
    %c0_i32_0 = arith.constant 0 : i32
    %c0_i32_1 = arith.constant 0 : i32
    return %arg0, %c0_i32, %c0_i32_0 : i32, i32, i32
  }
  func.func @transform_8(%arg0: i32) -> (i32, i32, i32) {
    %c0_i32 = arith.constant 0 : i32
    %c0_i32_0 = arith.constant 0 : i32
    %c0_i32_1 = arith.constant 0 : i32
    return %arg0, %c0_i32, %c0_i32_0 : i32, i32, i32
  }
  func.func @transform_9(%arg0: i32) -> (i32, i32, i32) {
    %c0_i32 = arith.constant 0 : i32
    %c0_i32_0 = arith.constant 0 : i32
    %c0_i32_1 = arith.constant 0 : i32
    return %arg0, %c0_i32, %c0_i32_0 : i32, i32, i32
  }
  func.func @transform_10(%arg0: i32) -> (i32, i32, i32) {
    %c0_i32 = arith.constant 0 : i32
    %c0_i32_0 = arith.constant 0 : i32
    %c0_i32_1 = arith.constant 0 : i32
    return %arg0, %c0_i32, %c0_i32_0 : i32, i32, i32
  }
  func.func @transform_11(%arg0: i32) -> (i32, i32) {
    %c0_i32 = arith.constant 0 : i32
    %c0_i32_0 = arith.constant 0 : i32
    %c0_i32_1 = arith.constant 0 : i32
    return %c0_i32, %c0_i32_0 : i32, i32
  }
  func.func @transform_12(%arg0: i32) -> (i32, i32) {
    %c0_i32 = arith.constant 0 : i32
    %c0_i32_0 = arith.constant 0 : i32
    %c0_i32_1 = arith.constant 0 : i32
    return %c0_i32, %c0_i32_0 : i32, i32
  }
  func.func @transform_13(%arg0: i32) -> (i32, i32) {
    %c0_i32 = arith.constant 0 : i32
    %c0_i32_0 = arith.constant 0 : i32
    %c0_i32_1 = arith.constant 0 : i32
    return %c0_i32, %c0_i32_0 : i32, i32
  }
  func.func @transform_14(%arg0: i32) -> (i32, i32) {
    %c0_i32 = arith.constant 0 : i32
    %c0_i32_0 = arith.constant 0 : i32
    %c0_i32_1 = arith.constant 0 : i32
    return %c0_i32, %c0_i32_0 : i32, i32
  }
  func.func @transform_15(%arg0: i32) -> (i32, i32) {
    %c0_i32 = arith.constant 0 : i32
    %c0_i32_0 = arith.constant 0 : i32
    %c0_i32_1 = arith.constant 0 : i32
    return %c0_i32, %c0_i32_0 : i32, i32
  }
  func.func @transform_16(%arg0: i32) -> (i32, i32) {
    %c0_i32 = arith.constant 0 : i32
    %c0_i32_0 = arith.constant 0 : i32
    %c0_i32_1 = arith.constant 0 : i32
    return %c0_i32, %c0_i32_0 : i32, i32
  }
  func.func @transform_17(%arg0: i32) -> (i32, i32) {
    %c0_i32 = arith.constant 0 : i32
    %c0_i32_0 = arith.constant 0 : i32
    %c0_i32_1 = arith.constant 0 : i32
    return %c0_i32, %c0_i32_0 : i32, i32
  }
  func.func @transform_18(%arg0: i32) -> (i32, i32) {
    %c0_i32 = arith.constant 0 : i32
    %c0_i32_0 = arith.constant 0 : i32
    %c0_i32_1 = arith.constant 0 : i32
    return %c0_i32, %c0_i32_0 : i32, i32
  }
  func.func @transform_19(%arg0: i32) -> (i32, i32) {
    %c0_i32 = arith.constant 0 : i32
    %c0_i32_0 = arith.constant 0 : i32
    %c0_i32_1 = arith.constant 0 : i32
    return %c0_i32, %c0_i32_0 : i32, i32
  }
  func.func @transform_20(%arg0: i32) -> (i32, i32) {
    %c0_i32 = arith.constant 0 : i32
    %c0_i32_0 = arith.constant 0 : i32
    %c0_i32_1 = arith.constant 0 : i32
    return %c0_i32, %c0_i32_0 : i32, i32
  }
  func.func @transform_21(%arg0: i32) -> (i32, i32) {
    %c0_i32 = arith.constant 0 : i32
    %c0_i32_0 = arith.constant 0 : i32
    %c0_i32_1 = arith.constant 0 : i32
    return %c0_i32, %c0_i32_0 : i32, i32
  }
}

</mosaic_0001>

<bundles_post_ra>
// kernel: tpu_custom_call.1
= control target key start
LH: loop header
LB: loop body
LE: loop exit
PB: predicated region body
PF: predicated region fallthrough
CT: control target
= control target key end

     0   :  { %s2262_s0 = inlined_call_operand.vmem [shape: bf16[16,32], index: 0, kind: input, shape index: {}]   ;;  %s2263_s1 = inlined_call_operand.vmem [shape: bf16[16,16], index: 1, kind: input, shape index: {}]   ;;  %s2264_s2 = inlined_call_operand.vmem [shape: bf16[16,8], index: 2, kind: input, shape index: {}]   ;;  %s2265_s3 = inlined_call_operand.vmem [shape: f32[1,16], index: 3, kind: input, shape index: {}]   ;;  %s2266_s4 = inlined_call_operand.vmem [shape: bf16[5,8,32], index: 4, kind: input, shape index: {}]   ;;  %s2267_s5 = inlined_call_operand.vmem [shape: bf16[5,32,64], index: 5, kind: input, shape index: {}]   ;;  %s2268_s6 = inlined_call_operand.vmem [shape: f32[5,1,64], index: 6, kind: input, shape index: {}]   ;;  %s2269_s7 = inlined_call_operand.vmem [shape: bf16[5,64,32], index: 7, kind: input, shape index: {}]   ;;  %s2270_s8 = inlined_call_operand.vmem [shape: f32[5,1,32], index: 8, kind: input, shape index: {}]   ;;  %s2271_s9 = inlined_call_operand.vmem [shape: f32[5,1,32], index: 9, kind: input, shape index: {}]   ;;  %s2272_s10 = inlined_call_operand.vmem [shape: f32[5,1,32], index: 10, kind: input, shape index: {}]   ;;  %s2273_s11 = inlined_call_operand.vmem [shape: f32[8,16], index: 11, kind: input, shape index: {}]   ;;  %s2274_s12 = inlined_call_operand.vmem [shape: bf16[32,64], index: 12, kind: input, shape index: {}]   ;;  %s2275_s13 = inlined_call_operand.vmem [shape: f32[1,64], index: 13, kind: input, shape index: {}]   ;;  %s2276_s14 = inlined_call_operand.vmem [shape: bf16[64,32], index: 14, kind: input, shape index: {}]   ;;  %s2277_s15 = inlined_call_operand.vmem [shape: f32[1,32], index: 15, kind: input, shape index: {}]   ;;  %s2278_s16 = inlined_call_operand.vmem [shape: bf16[32,32], index: 16, kind: input, shape index: {}]   ;;  %s2279_s17 = inlined_call_operand.vmem [shape: f32[1,32], index: 17, kind: input, shape index: {}]   ;;  %s2280_s18 = inlined_call_operand.vmem [shape: bf16[32,2], index: 18, kind: input, shape index: {}]   ;;  %s2281_s19 = inlined_call_operand.vmem [shape: f32[1,2], index: 19, kind: input, shape index: {}]   ;;  %s2282_s20 = inlined_call_operand.hbm [shape: f32[8,64], index: 20, kind: output, shape index: {0}]   ;;  %s2283_s21 = inlined_call_operand.vmem [shape: f32[8,2], index: 21, kind: output, shape index: {1}]  }
   0x1   :  { %2287 = sst [smem:[#allocation7_spill]] %s2262_s0 }
   0x2   :  { %2288 = sst [smem:[#allocation8_spill]] %s2263_s1 }
   0x3   :  { %2289 = sst [smem:[#allocation9_spill]] %s2264_s2 }
   0x4   :  { %2290 = sst [smem:[#allocation10_spill]] %s2265_s3 }
   0x5   :  { %2291 = sst [smem:[#allocation11_spill]] %s2266_s4 }
   0x6   :  { %2292 = sst [smem:[#allocation12_spill]] %s2267_s5 }
   0x7   :  { %2293 = sst [smem:[#allocation13_spill]] %s2277_s15 }
   0x8   :  { %2294 = sst [smem:[#allocation14_spill]] %s2279_s17 }
   0x9   :  { %2295 = sst [smem:[#allocation15_spill]] %s2280_s18 }
   0xa   :  { %2296 = sst [smem:[#allocation16_spill]] %s2281_s19 }
   0xb   :  { %2297 = sst [smem:[#allocation17_spill]] %s2282_s20 }
   0xc   :  { %2298 = sst [smem:[#allocation18_spill]] %s2283_s21 }
   0xd   :  { %27 = vsyncpa [#allocation4], 0  ;;  %s2069_s2 = smov 0  }
   0xe LB: > { %2299 = sst [smem:[#allocation6_spill]] %s1952_s2  ;;  %s2075_s25 = sadd.s32 4294967295, %s1952_s2   ;;  %s1952_s2 = sphi %s2069_s2, %s33_s2  }
   0xf   : > { %p1697_p0 = scmp.ge.s32.totalorder %s1952_s2, 1  ;;  %p632_p1 = scmp.lt.s32.totalorder %s1952_s2, 6 }
  0x11   : > { %p633_p2 = pnand %p1697_p0, %p632_p1 }
  0x12   : > { %p708_p3 = scmp.lt.s32.totalorder (!%p633_p2), %s2075_s25, 4  ;;  %s2300_s0 = sld [smem:[#allocation11_spill]] (!%p633_p2) }
  0x13   : > { %636 = sbr.rel (%p633_p2) target bundleno = 1904 (0x770), region = 100  ;;  %s2301_s22 = sld [smem:[#allocation12_spill]] (!%p633_p2) }
  0x14   : > { %p1703_p4 = scmp.ne.s32.totalorder (!%p633_p2), %s2075_s25, 0 }
  0x18   : > { %s2081_s26 = scalar_select %p708_p3, %s2075_s25, 4 }
  0x19   : > { %s2302_s19 = sld [smem:[#allocation7_spill]] (!%p1703_p4) }
  0x1a   : > { %s1698_s27 = sshll.u32 %s2081_s26, 2  ;;  %s1750_s3 = sshll.u32 %s2081_s26, 4 }
  0x1b   : > { %s711_s4 = scalar_lea.vmem %s2300_s0, %s1698_s27  ;;  %s2091_s23 = scalar_lea.vmem %s2301_s22, %s1750_s3 }
  0x1c   : > { %s719_s2 = scalar_lea.vmem %s2268_s6, %s2081_s26  ;;  %s1751_s20 = sshll.u32 %s2081_s26, 5 }
  0x1d   : > { %s2101_s17 = scalar_lea.vmem %s2269_s7, %s1751_s20  ;;  %s727_s28 = scalar_lea.vmem %s2270_s8, %s2081_s26 }
  0x1e   : > { %s730_s0 = scalar_lea.vmem %s2271_s9, %s2081_s26  ;;  %s733_s5 = scalar_lea.vmem %s2272_s10, %s2081_s26 }
  0x1f   : > { %738 = sbr.rel (%p1703_p4) target bundleno = 38 (0x26), region = 104 }
  0x24   : > { %v739_v0 = vld [vmem:[%s2302_s19] sm:$0xf]  ;;  %vm741_vm0 = vcmask 257024   ;;  %v740_v1 = vld [vmem:[%s2302_s19 + $0x4] sm:$0xf] }
  0x25   : > { %742 = vst.msk [vmem:[#allocation2] sm:$0xf] %vm741_vm0, %v739_v0  ;;  %743 = vst.msk [vmem:[#allocation2 + $0x4] sm:$0xf] %vm741_vm0, %v740_v1 }
  0x26 PF: > { %v750_v2 = vld [vmem:[%s711_s4] sm:$0xf]  ;;  %vm760_vm1 = vcmask 1043456   ;;  %v1954_v3 = vmov 0.0   ;;  %s2303_s24 = sld [smem:[#allocation9_spill]]  ;;  %vm1955_vm2 = vmmov 0   ;;  %v1167_v49 = vlaneseq }
  0x27   : > { %1789 = vmatprep.subr.bf16.mxu0 %v1954_v3  ;;  %v762_v4 = vsel %vm760_vm1, %v750_v2, 0  ;;  %1795 = vmatprep.subr.bf16.mxu1 %v1954_v3  ;;  %vm756_vm3 = vcmask 64512   ;;  %s2304_s29 = sld [smem:[#allocation8_spill]]  ;;  %vm816_vm4 = vcmask 130048   ;;  %v1900_v8 = vld [vmem:[%s2091_s23 + $0x8] sm:$0xff]   ;;  %v1901_v9 = vld [vmem:[%s2091_s23] sm:$0xff]  }
  0x28   : > { %1790 = vmatpush3.bf16.msra.mxu0 %v762_v4  ;;  %1791 = vmatprep.mubr.msk.bf16.mxu0 %vm1955_vm2, %v1954_v3  ;;  %v1902_v10 = vld [vmem:[%s2101_s17 + $0x18] sm:$0xff]   ;;  %vm885_vm5 = vcmask 261120   ;;  %v1903_v22 = vld [vmem:[%s2101_s17 + $0x10] sm:$0xff]   ;;  %v1904_v23 = vld [vmem:[%s2101_s17 + $0x8] sm:$0xff]   ;;  %vm972_vm6 = vcmask 523264   ;;  %s2305_s1 = sld [smem:[#allocation10_spill]] }
  0x29   : > { %1797 = vmatprep.mubr.msk.bf16.mxu1 %vm1955_vm2, %v1954_v3  ;;  %1801 = vmatprep.subr.bf16.mxu0 %v1954_v3  ;;  %v1905_v24 = vld [vmem:[%s2101_s17] sm:$0xff]   ;;  %v1168_v53 = vshrl.u32 %v1167_v49, 7  ;;  %p1723_p5 = scmp.ge.s32.totalorder %s2075_s25, 4 }
  0x2a   : > { %v1709_v25 = vld [vmem:[%s719_s2] ss:$0 sm:$0xff] }
  0x2b   : > { %v1713_v37 = vld [vmem:[%s727_s28] ss:$0 sm:$0xff]  ;;  %v1169_v55 = vsub.s32 0, %v1168_v53 }
  0x2c   : > { %v1897_v5 = vld [vmem:[#allocation2] sm:$0xff]  }
  0x2d   : > { %v1898_v6 = vld [vmem:[%s2303_s24] sm:$0xff]   ;;  %1796 = vmatpush3.bf16.msra.mxu1 %v1897_v5 }
  0x2e   : > { %v1899_v7 = vld [vmem:[%s2304_s29] sm:$0xff]   ;;  %1809 = vmatprep.subr.bf16.mxu1 %v1954_v3  ;;  %1792 = vmatmul.mubr.msk.bf16.vlgmr.msra.gmra.mxu0 %vm756_vm3, %v1898_v6 }
  0x2f   : > { %1805 = vmatprep.mubr.msk.bf16.mxu0 %vm1955_vm2, %v1954_v3  ;;  %1802 = vmatpush3.bf16.msra.mxu0 %v1900_v8  ;;  %v1017_v42 = vld [vmem:[%s2305_s1] sm:$0x1] }
  0x30   : > { %1798 = vmatmul.mubr.msk.bf16.vlgmr.msra.gmra.mxu1 %vm816_vm4, %v1899_v7  ;;  %1803 = vmatprep.subr.bf16.mxu0 %v1954_v3  ;;  %v1721_v59 = vld [vmem:[%s730_s0] ss:$0 sm:$0xff] }
  0x31   : > { %1817 = vmatprep.mubr.msk.bf16.mxu1 %vm1955_vm2, %v1954_v3  ;;  %1810 = vmatpush3.bf16.msra.mxu1 %v1902_v10  ;;  %v1722_v0 = vld [vmem:[%s733_s5] ss:$0 sm:$0xff] }
  0x32   : > { %1811 = vmatprep.subr.bf16.mxu1 %v1954_v3 }
  0x33   : > { %1804 = vmatpush3.bf16.msra.mxu0 %v1901_v9 }
  0x34   : > { %1821 = vmatprep.subr.mxu0 %v1954_v3 }
  0x35   : > { %1812 = vmatpush3.bf16.msra.mxu1 %v1903_v22 }
  0x36   : > { %1813 = vmatprep.subr.bf16.mxu1 %v1954_v3 }
  0x39   : > { %1814 = vmatpush3.bf16.msra.mxu1 %v1904_v23 }
  0x3a   : > { %1815 = vmatprep.subr.bf16.mxu1 %v1954_v3 }
  0x3d   : > { %1816 = vmatpush3.bf16.msra.mxu1 %v1905_v24 }
  0xee   : > { %v798_v11 = vpop.f32.mrf.mxu0 }
  0xf0   : > { %v854_v12 = vpop.f32.mrf.mxu1  ;;  %v1793_v13 = vpop.f32.mrf.mxu0 }
  0xf1   : > { %v855_v17 = vadd.f32 %v854_v12, %v798_v11 }
  0xf2   : > { %v1799_v14 = vpop.f32.mrf.mxu1  ;;  %v801_v15 = vpop.f32.mrf.mxu0 }
  0xf4   : > { %v857_v16 = vpop.f32.mrf.mxu1  ;;  %v1794_v19 = vpop.f32.mrf.mxu0 }
  0xf5   : > { %v858_v18 = vadd.f32 %v857_v16, %v801_v15 }
  0xf6   : > { %v1800_v20 = vpop.f32.mrf.mxu1 }
  0xf7   : > { %v861_v21 = vpack.c.bf16 %v858_v18, %v855_v17 }
  0xf9   : > { %1806 = vmatmul.mubr.msk.bf16.vlgmr.msra.gmra.mxu0 %vm885_vm5, %v861_v21 }
  0xfa   : > { %1825 = vmatprep.mubr.msk.f32.mxu0 %vm1955_vm2, %v1954_v3 }
 0x1b9   : > { %v923_v26 = vpop.f32.mrf.mxu0 }
 0x1ba   : > { %v924_v28 = vadd.f32 %v1709_v25, %v923_v26 }
 0x1bb   : > { %v1807_v27 = vpop.f32.mrf.mxu0 }
 0x1bc   : > { %v930_v32 = vmax.f32 %v924_v28, 0.0 }
 0x1bd   : > { %v926_v29 = vpop.f32.mrf.mxu0 }
 0x1be   : > { %v927_v30 = vadd.f32 %v1709_v25, %v926_v29 }
 0x1bf   : > { %v1808_v31 = vpop.f32.mrf.mxu0 }
 0x1c0   : > { %v931_v33 = vmax.f32 %v927_v30, 0.0 }
 0x1c2   : > { %v932_v34 = vpack.c.bf16 %v931_v33, %v930_v32 }
 0x1c4   : > { %1818 = vmatmul.mubr.msk.bf16.vlgmr.msra.gmra.mxu1 %vm972_vm6, %v932_v34 }
 0x284   : > { %v1010_v35 = vpop.f32.mrf.mxu1 }
 0x285   : > { %v1011_v41 = vadd.f32 %v1713_v37, %v1010_v35 }
 0x286   : > { %v1819_v36 = vpop.f32.mrf.mxu1 }
 0x287   : > { %v1091_v44 = vmul.f32 %v1011_v41, %v1011_v41 }
 0x288   : > { %v1013_v38 = vpop.f32.mrf.mxu1 }
 0x289   : > { %v1014_v39 = vadd.f32 %v1713_v37, %v1013_v38 }
 0x28a   : > { %v1820_v40 = vpop.f32.mrf.mxu1 }
 0x28b   : > { %1822 = vmatpush3.msra.mxu0 %v1014_v39  ;;  %v1092_v43 = vmul.f32 %v1014_v39, %v1014_v39 }
 0x28c   : > { %1823 = vmatprep.subr.mxu0 %v1954_v3 }
 0x28d   : > { %1824 = vmatpush3.msra.mxu0 %v1011_v41 }
 0x28e   : > { %1826 = vmatmul.mubr.msk.f32.vlgmr.msra.gmra.mxu0 %vm816_vm4, %v1017_v42  ;;  %1828 = vmatprep.subr.mxu0 %v1954_v3 }
 0x28f   : > { %1829 = vmatpush3.msra.mxu0 %v1092_v43  ;;  %1832 = vmatprep.mubr.msk.f32.mxu0 %vm1955_vm2, %v1954_v3 }
 0x290   : > { %1830 = vmatprep.subr.mxu0 %v1954_v3 }
 0x291   : > { %1831 = vmatpush3.msra.mxu0 %v1091_v44 }
 0x292   : > { %1833 = vmatmul.mubr.msk.f32.vlgmr.msra.gmra.mxu0 %vm816_vm4, %v1017_v42 }
 0x34e   : > { %v1087_v45 = vpop.f32.mrf.mxu0 }
 0x34f   : > { %v1163_v47 = vmul.f32 %v1087_v45, %v1087_v45  ;;  %v1170_v56 = vrot.slane %v1087_v45, %v1169_v55 }
 0x350   : > { %v1827_v46 = vpop.f32.mrf.mxu0 }
 0x351   : > { %v1171_v57 = vsub.f32 %v1011_v41, %v1170_v56  ;;  %v1172_v58 = vsub.f32 %v1014_v39, %v1170_v56 }
 0x352   : > { %v1159_v48 = vpop.f32.mrf.mxu0 }
 0x353   : > { %v1164_v50 = vsub.f32 %v1159_v48, %v1163_v47  ;;  %v1179_v61 = vmul.f32 %v1721_v59, %v1171_v57  ;;  %v1180_v62 = vmul.f32 %v1721_v59, %v1172_v58 }
 0x354   : > { %v1834_v51 = vpop.f32.mrf.mxu0 }
 0x355   : > { %v1165_v52 = vmax.f32 %v1164_v50, 0.0 }
 0x357   : > { %v1181_v54 = vadd.f32 1e-05, %v1165_v52 }
 0x359   : > { %1906 = vrsqrt.f32 %v1181_v54 }
 0x366   : > { %v1907_v60 = vpop.eup %1906 }
 0x367   : > { %v1186_v63 = vrot.slane %v1907_v60, %v1169_v55  ;;  %1201 = sbr.rel (%p1723_p5) target bundleno = 882 (0x372), region = 108 }
 0x369   : > { %v1187_v1 = vmul.f32 %v1186_v63, %v1179_v61  ;;  %v1188_v2 = vmul.f32 %v1186_v63, %v1180_v62 }
 0x36b   : > { %v1196_v3 = vadd.f32 %v1722_v0, %v1187_v1  ;;  %v1197_v4 = vadd.f32 %v1722_v0, %v1188_v2 }
 0x36c   : > { %vm1212_vm7 = vcmask 257024  }
 0x36d   : > { %v1202_v5 = vmax.f32 %v1196_v3, 0.0  ;;  %v1203_v6 = vmax.f32 %v1197_v4, 0.0 }
 0x36f   : > { %v1752_v7 = vpack.c.bf16 %v1202_v5, %v1202_v5  ;;  %v1753_v8 = vpack.c.bf16 %v1203_v6, %v1203_v6 }
 0x371   : > { %1213 = vst.msk [vmem:[#allocation2] sm:$0xf] %vm1212_vm7, %v1752_v7  ;;  %1214 = vst.msk [vmem:[#allocation2 + $0x4] sm:$0xf] %vm1212_vm7, %v1753_v8 }
 0x372 PF: > { %p1726_p6 = scmp.ne.s32.totalorder %s2075_s25, 4 }
 0x373   : > { %s2306_s18 = sld [smem:[#allocation13_spill]] (!%p1726_p6) }
 0x374   : > { %1218 = sbr.rel (%p1726_p6) target bundleno = 1883 (0x75b), region = 112  ;;  %s2307_s27 = sld [smem:[#allocation15_spill]] (!%p1726_p6) }
 0x375   : > { %s2308_s30 = sld [smem:[#allocation14_spill]] (!%p1726_p6) }
 0x376   : > { %s2309_s1 = sld [smem:[#allocation16_spill]] (!%p1726_p6) }
 0x377   : > { %s2310_s21 = sld [smem:[#allocation18_spill]] (!%p1726_p6) }
 0x379   : > { %v1219_v9 = vld [vmem:[%s2273_s11] sm:$0xff]  ;;  %v1908_v10 = vld [vmem:[%s2274_s12 + $0x8] sm:$0xff]   ;;  %v1956_v11 = vmov 0.0   ;;  %vm1957_vm8 = vmmov 0   ;;  %v1910_v13 = vld [vmem:[%s2276_s14 + $0x18] sm:$0xff]   ;;  %vm1580_vm9 = vcmask 15360  }
 0x37a   : > { %1835 = vmatprep.subr.mxu0 %v1956_v11  ;;  %1839 = vmatprep.mubr.msk.f32.mxu0 %vm1957_vm8, %v1956_v11  ;;  %v1909_v12 = vld [vmem:[%s2274_s12] sm:$0xff]   ;;  %v1911_v14 = vld [vmem:[%s2276_s14 + $0x10] sm:$0xff]   ;;  %v1912_v15 = vld [vmem:[%s2276_s14 + $0x8] sm:$0xff]  }
 0x37b   : > { %1836 = vmatpush3.msra.mxu0 %v1197_v4  ;;  %1842 = vmatprep.subr.bf16.mxu1 %v1956_v11  ;;  %v1913_v19 = vld [vmem:[%s2276_s14] sm:$0xff]   ;;  %v1914_v20 = vld [vmem:[%s2278_s16 + $0x8] sm:$0xff]  }
 0x37c   : > { %1837 = vmatprep.subr.mxu0 %v1956_v11  ;;  %1843 = vmatpush3.bf16.msra.mxu1 %v1908_v10  ;;  %v1728_v21 = vld [vmem:[%s2275_s13] ss:$0 sm:$0xff]  ;;  %v1916_v35 = vld [vmem:[%s2307_s27 + $0x8] sm:$0xff]  }
 0x37d   : > { %1838 = vmatpush3.msra.mxu0 %v1196_v3  ;;  %1844 = vmatprep.subr.bf16.mxu1 %v1956_v11  ;;  %v1915_v28 = vld [vmem:[%s2278_s16] sm:$0xff]  }
 0x37e   : > { %1840 = vmatmul.mubr.msk.f32.vlgmr.msra.gmra.mxu0 %vm816_vm4, %v1219_v9  ;;  %1846 = vmatprep.mubr.msk.bf16.mxu1 %vm1957_vm8, %v1956_v11  ;;  %v1732_v29 = vld [vmem:[%s2306_s18] ss:$0 sm:$0xff] }
 0x37f   : > { %1850 = vmatprep.subr.bf16.mxu0 %v1956_v11  ;;  %1858 = vmatprep.mubr.msk.bf16.mxu0 %vm1957_vm8, %v1956_v11  ;;  %v1917_v38 = vld [vmem:[%s2307_s27] sm:$0xff]  }
 0x380   : > { %1845 = vmatpush3.bf16.msra.mxu1 %v1909_v12  ;;  %1851 = vmatpush3.bf16.msra.mxu0 %v1910_v13  ;;  %v1738_v39 = vld [vmem:[%s2308_s30] ss:$0 sm:$0xff] }
 0x381   : > { %1862 = vmatprep.subr.bf16.mxu1 %v1956_v11  ;;  %1852 = vmatprep.subr.bf16.mxu0 %v1956_v11  ;;  %v1742_v47 = vld [vmem:[%s2309_s1] ss:$0 sm:$0xff] }
 0x384   : > { %1853 = vmatpush3.bf16.msra.mxu0 %v1911_v14 }
 0x385   : > { %1854 = vmatprep.subr.bf16.mxu0 %v1956_v11 }
 0x388   : > { %1855 = vmatpush3.bf16.msra.mxu0 %v1912_v15 }
 0x389   : > { %1856 = vmatprep.subr.bf16.mxu0 %v1956_v11 }
 0x38c   : > { %1857 = vmatpush3.bf16.msra.mxu0 %v1913_v19 }
 0x43e   : > { %v1289_v16 = vpop.f32.mrf.mxu0 }
 0x43f   : > { %v1293_v17 = vpack.c.bf16 %v1289_v16, %v1289_v16 }
 0x440   : > { %v1841_v18 = vpop.f32.mrf.mxu0 }
 0x441   : > { %1847 = vmatmul.mubr.msk.bf16.vlgmr.msra.gmra.mxu1 %vm885_vm5, %v1293_v17 }
 0x442   : > { %1866 = vmatprep.mubr.msk.bf16.mxu1 %vm1957_vm8, %v1956_v11  ;;  %1863 = vmatpush3.bf16.msra.mxu1 %v1914_v20 }
 0x443   : > { %1864 = vmatprep.subr.bf16.mxu1 %v1956_v11 }
 0x446   : > { %1865 = vmatpush3.bf16.msra.mxu1 %v1915_v28 }
 0x447   : > { %1870 = vmatprep.subr.bf16.mxu1 %v1956_v11 }
 0x501   : > { %v1354_v22 = vpop.f32.mrf.mxu1 }
 0x502   : > { %v1355_v23 = vadd.f32 %v1728_v21, %v1354_v22 }
 0x503   : > { %v1848_v24 = vpop.f32.mrf.mxu1 }
 0x504   : > { %v1360_v25 = vpack.c.bf16 %v1355_v23, %v1355_v23  ;;  %1579 = vst.msk [vmem:[#allocation3] sm:$0xff] %vm972_vm6, %v1355_v23 }
 0x505   : > { %v1357_v26 = vpop.f32.mrf.mxu1 }
 0x506   : > { %1859 = vmatmul.mubr.msk.bf16.vlgmr.msra.gmra.mxu0 %vm972_vm6, %v1360_v25 }
 0x507   : > { %v1849_v27 = vpop.f32.mrf.mxu1 }
 0x5c6   : > { %v1437_v30 = vpop.f32.mrf.mxu0 }
 0x5c7   : > { %v1438_v31 = vadd.f32 %v1732_v29, %v1437_v30 }
 0x5c8   : > { %v1860_v32 = vpop.f32.mrf.mxu0 }
 0x5c9   : > { %v1443_v33 = vmax.f32 %v1438_v31, 0.0 }
 0x5ca   : > { %v1440_v34 = vpop.f32.mrf.mxu0 }
 0x5cb   : > { %v1444_v36 = vpack.c.bf16 %v1443_v33, %v1443_v33 }
 0x5cc   : > { %v1861_v37 = vpop.f32.mrf.mxu0 }
 0x5cd   : > { %1867 = vmatmul.mubr.msk.bf16.vlgmr.msra.gmra.mxu1 %vm885_vm5, %v1444_v36 }
 0x5ce   : > { %1871 = vmatpush3.bf16.msra.mxu1 %v1916_v35  ;;  %1874 = vmatprep.mubr.msk.bf16.mxu1 %vm1957_vm8, %v1956_v11 }
 0x5cf   : > { %1872 = vmatprep.subr.bf16.mxu1 %v1956_v11 }
 0x5d2   : > { %1873 = vmatpush3.bf16.msra.mxu1 %v1917_v38 }
 0x68d   : > { %v1505_v40 = vpop.f32.mrf.mxu1 }
 0x68e   : > { %v1506_v41 = vadd.f32 %v1738_v39, %v1505_v40 }
 0x68f   : > { %v1868_v42 = vpop.f32.mrf.mxu1 }
 0x690   : > { %v1511_v43 = vmax.f32 %v1506_v41, 0.0 }
 0x691   : > { %v1508_v44 = vpop.f32.mrf.mxu1 }
 0x692   : > { %v1512_v45 = vpack.c.bf16 %v1511_v43, %v1511_v43 }
 0x693   : > { %v1869_v46 = vpop.f32.mrf.mxu1 }
 0x694   : > { %1875 = vmatmul.mubr.msk.bf16.vlgmr.msra.gmra.mxu1 %vm885_vm5, %v1512_v45 }
 0x754   : > { %v1573_v48 = vpop.f32.mrf.mxu1 }
 0x755   : > { %v1574_v49 = vadd.f32 %v1742_v47, %v1573_v48 }
 0x756   : > { %v1876_v50 = vpop.f32.mrf.mxu1 }
 0x757   : > { %1581 = vst.msk [vmem:[%s2310_s21] sm:$0xff] %vm1580_vm9, %v1574_v49 }
 0x758   : > { %v1576_v51 = vpop.f32.mrf.mxu1 }
 0x75a   : > { %v1877_v52 = vpop.f32.mrf.mxu1 }
 0x75b PF: > { %p1882_p7 = scmp.eq.s32.totalorder %s2075_s25, 4  ;;  %s1958_s15 = smov [#allocation3]  }
 0x75c   : > { %s1589_s26 = sshll.u32 %s1958_s15, 4  ;;  %s1590_s26 = int_to_ptr.vmem [resolvable:$true] %s1589_s26 }
 0x75d   : > { %s1918_s0 = scalar_lea.vmem %s1590_s26, 128  ;;  %p1925_p11 = scmp.lt.s32.totalorder %s1590_s26, %s1590_s26 }
 0x75e   : > { %p1919_p8 = scmp.ne.s32.totalorder %s1590_s26, %s1918_s0  ;;  %p1926_p12 = scmp.lt.s32.totalorder %s1918_s0, %s1918_s0 }
 0x760   : > { %p1920_p9 = pnand %p1919_p8, %p1882_p7  ;;  %p1927_p13 = por %p1926_p12, %p1925_p11 }
 0x762   : > { %p1921_p10 = pneg %p1920_p9 }
 0x764   : > { %p1928_p0 = pnand %p1927_p13, %p1921_p10 }
 0x766   : > { %1931 = shalt.err (!%p1928_p0)
}
 0x767   : > { %s2311_s24 = sld [smem:[#allocation17_spill]] }
 0x76d   : > { %1879 = dma.vmem_to_hbm [thread:$0]  (%p1882_p7), %s1590_s26, 128, %s2311_s24, [#allocation4]  }
 0x76e   : > { %1947 = dma.done.wait (%p1882_p7), [#allocation4], 128  }
 0x76f   : > { %1949 = vsyncadd (%p1882_p7), [#allocation4], 4294967168 }
 0x770 PF: > { %s2312_s4 = sld [smem:[#allocation6_spill]] }
 0x776   : > { %s33_s2 = sadd.s32 1, %s2312_s4  }
 0x777   : > { %p30_p1 = scmp.ge.s32.totalorder %s33_s2, 7  }
 0x779   :  { %32 = sbr.rel (!%p30_p1) target bundleno = 14 (0xe), region = 165 }
 0x77e   :  { %1608 = vsyncpa [#allocation4], 1 }
 0x77f   :  { %1610 = vsyncpa [#allocation4 + $0x1], 1 }

// kernel: tpu_custom_call.1
= control target key start
LH: loop header
LB: loop body
LE: loop exit
PB: predicated region body
PF: predicated region fallthrough
CT: control target
= control target key end

     0   :  { %s2262_s0 = inlined_call_operand.vmem [shape: bf16[16,32], index: 0, kind: input, shape index: {}]   ;;  %s2263_s1 = inlined_call_operand.vmem [shape: bf16[16,16], index: 1, kind: input, shape index: {}]   ;;  %s2264_s2 = inlined_call_operand.vmem [shape: bf16[16,8], index: 2, kind: input, shape index: {}]   ;;  %s2265_s3 = inlined_call_operand.vmem [shape: f32[1,16], index: 3, kind: input, shape index: {}]   ;;  %s2266_s4 = inlined_call_operand.vmem [shape: bf16[5,8,32], index: 4, kind: input, shape index: {}]   ;;  %s2267_s5 = inlined_call_operand.vmem [shape: bf16[5,32,64], index: 5, kind: input, shape index: {}]   ;;  %s2268_s6 = inlined_call_operand.vmem [shape: f32[5,1,64], index: 6, kind: input, shape index: {}]   ;;  %s2269_s7 = inlined_call_operand.vmem [shape: bf16[5,64,32], index: 7, kind: input, shape index: {}]   ;;  %s2270_s8 = inlined_call_operand.vmem [shape: f32[5,1,32], index: 8, kind: input, shape index: {}]   ;;  %s2271_s9 = inlined_call_operand.vmem [shape: f32[5,1,32], index: 9, kind: input, shape index: {}]   ;;  %s2272_s10 = inlined_call_operand.vmem [shape: f32[5,1,32], index: 10, kind: input, shape index: {}]   ;;  %s2273_s11 = inlined_call_operand.vmem [shape: f32[8,16], index: 11, kind: input, shape index: {}]   ;;  %s2274_s12 = inlined_call_operand.vmem [shape: bf16[32,64], index: 12, kind: input, shape index: {}]   ;;  %s2275_s13 = inlined_call_operand.vmem [shape: f32[1,64], index: 13, kind: input, shape index: {}]   ;;  %s2276_s14 = inlined_call_operand.vmem [shape: bf16[64,32], index: 14, kind: input, shape index: {}]   ;;  %s2277_s15 = inlined_call_operand.vmem [shape: f32[1,32], index: 15, kind: input, shape index: {}]   ;;  %s2278_s16 = inlined_call_operand.vmem [shape: bf16[32,32], index: 16, kind: input, shape index: {}]   ;;  %s2279_s17 = inlined_call_operand.vmem [shape: f32[1,32], index: 17, kind: input, shape index: {}]   ;;  %s2280_s18 = inlined_call_operand.vmem [shape: bf16[32,2], index: 18, kind: input, shape index: {}]   ;;  %s2281_s19 = inlined_call_operand.vmem [shape: f32[1,2], index: 19, kind: input, shape index: {}]   ;;  %s2282_s20 = inlined_call_operand.hbm [shape: f32[8,64], index: 20, kind: output, shape index: {0}]   ;;  %s2283_s21 = inlined_call_operand.vmem [shape: f32[8,2], index: 21, kind: output, shape index: {1}]  }
   0x1   :  { %2287 = sst [smem:[#allocation7_spill]] %s2262_s0 }
   0x2   :  { %2288 = sst [smem:[#allocation8_spill]] %s2263_s1 }
   0x3   :  { %2289 = sst [smem:[#allocation9_spill]] %s2264_s2 }
   0x4   :  { %2290 = sst [smem:[#allocation10_spill]] %s2265_s3 }
   0x5   :  { %2291 = sst [smem:[#allocation11_spill]] %s2266_s4 }
   0x6   :  { %2292 = sst [smem:[#allocation12_spill]] %s2267_s5 }
   0x7   :  { %2293 = sst [smem:[#allocation13_spill]] %s2277_s15 }
   0x8   :  { %2294 = sst [smem:[#allocation14_spill]] %s2279_s17 }
   0x9   :  { %2295 = sst [smem:[#allocation15_spill]] %s2280_s18 }
   0xa   :  { %2296 = sst [smem:[#allocation16_spill]] %s2281_s19 }
   0xb   :  { %2297 = sst [smem:[#allocation17_spill]] %s2282_s20 }
   0xc   :  { %2298 = sst [smem:[#allocation18_spill]] %s2283_s21 }
   0xd   :  { %27 = vsyncpa [#allocation4], 0  ;;  %s2069_s2 = smov 0  }
   0xe LB: > { %2299 = sst [smem:[#allocation6_spill]] %s1952_s2  ;;  %s2075_s25 = sadd.s32 4294967295, %s1952_s2   ;;  %s1952_s2 = sphi %s2069_s2, %s33_s2  }
   0xf   : > { %p1697_p0 = scmp.ge.s32.totalorder %s1952_s2, 1  ;;  %p632_p1 = scmp.lt.s32.totalorder %s1952_s2, 6 }
  0x11   : > { %p633_p2 = pnand %p1697_p0, %p632_p1 }
  0x12   : > { %p708_p3 = scmp.lt.s32.totalorder (!%p633_p2), %s2075_s25, 4  ;;  %s2300_s0 = sld [smem:[#allocation11_spill]] (!%p633_p2) }
  0x13   : > { %636 = sbr.rel (%p633_p2) target bundleno = 1904 (0x770), region = 100  ;;  %s2301_s22 = sld [smem:[#allocation12_spill]] (!%p633_p2) }
  0x14   : > { %p1703_p4 = scmp.ne.s32.totalorder (!%p633_p2), %s2075_s25, 0 }
  0x18   : > { %s2081_s26 = scalar_select %p708_p3, %s2075_s25, 4 }
  0x19   : > { %s2302_s19 = sld [smem:[#allocation7_spill]] (!%p1703_p4) }
  0x1a   : > { %s1698_s27 = sshll.u32 %s2081_s26, 2  ;;  %s1750_s3 = sshll.u32 %s2081_s26, 4 }
  0x1b   : > { %s711_s4 = scalar_lea.vmem %s2300_s0, %s1698_s27  ;;  %s2091_s23 = scalar_lea.vmem %s2301_s22, %s1750_s3 }
  0x1c   : > { %s719_s2 = scalar_lea.vmem %s2268_s6, %s2081_s26  ;;  %s1751_s20 = sshll.u32 %s2081_s26, 5 }
  0x1d   : > { %s2101_s17 = scalar_lea.vmem %s2269_s7, %s1751_s20  ;;  %s727_s28 = scalar_lea.vmem %s2270_s8, %s2081_s26 }
  0x1e   : > { %s730_s0 = scalar_lea.vmem %s2271_s9, %s2081_s26  ;;  %s733_s5 = scalar_lea.vmem %s2272_s10, %s2081_s26 }
  0x1f   : > { %738 = sbr.rel (%p1703_p4) target bundleno = 38 (0x26), region = 104 }
  0x24   : > { %v739_v0 = vld [vmem:[%s2302_s19] sm:$0xf]  ;;  %vm741_vm0 = vcmask 257024   ;;  %v740_v1 = vld [vmem:[%s2302_s19 + $0x4] sm:$0xf] }
  0x25   : > { %742 = vst.msk [vmem:[#allocation2] sm:$0xf] %vm741_vm0, %v739_v0  ;;  %743 = vst.msk [vmem:[#allocation2 + $0x4] sm:$0xf] %vm741_vm0, %v740_v1 }
  0x26 PF: > { %v750_v2 = vld [vmem:[%s711_s4] sm:$0xf]  ;;  %vm760_vm1 = vcmask 1043456   ;;  %v1954_v3 = vmov 0.0   ;;  %s2303_s24 = sld [smem:[#allocation9_spill]]  ;;  %vm1955_vm2 = vmmov 0   ;;  %v1167_v49 = vlaneseq }
  0x27   : > { %1789 = vmatprep.subr.bf16.mxu0 %v1954_v3  ;;  %v762_v4 = vsel %vm760_vm1, %v750_v2, 0  ;;  %1795 = vmatprep.subr.bf16.mxu1 %v1954_v3  ;;  %vm756_vm3 = vcmask 64512   ;;  %s2304_s29 = sld [smem:[#allocation8_spill]]  ;;  %vm816_vm4 = vcmask 130048   ;;  %v1900_v8 = vld [vmem:[%s2091_s23 + $0x8] sm:$0xff]   ;;  %v1901_v9 = vld [vmem:[%s2091_s23] sm:$0xff]  }
  0x28   : > { %1790 = vmatpush3.bf16.msra.mxu0 %v762_v4  ;;  %1791 = vmatprep.mubr.msk.bf16.mxu0 %vm1955_vm2, %v1954_v3  ;;  %v1902_v10 = vld [vmem:[%s2101_s17 + $0x18] sm:$0xff]   ;;  %vm885_vm5 = vcmask 261120   ;;  %v1903_v22 = vld [vmem:[%s2101_s17 + $0x10] sm:$0xff]   ;;  %v1904_v23 = vld [vmem:[%s2101_s17 + $0x8] sm:$0xff]   ;;  %vm972_vm6 = vcmask 523264   ;;  %s2305_s1 = sld [smem:[#allocation10_spill]] }
  0x29   : > { %1797 = vmatprep.mubr.msk.bf16.mxu1 %vm1955_vm2, %v1954_v3  ;;  %1801 = vmatprep.subr.bf16.mxu0 %v1954_v3  ;;  %v1905_v24 = vld [vmem:[%s2101_s17] sm:$0xff]   ;;  %v1168_v53 = vshrl.u32 %v1167_v49, 7  ;;  %p1723_p5 = scmp.ge.s32.totalorder %s2075_s25, 4 }
  0x2a   : > { %v1709_v25 = vld [vmem:[%s719_s2] ss:$0 sm:$0xff] }
  0x2b   : > { %v1713_v37 = vld [vmem:[%s727_s28] ss:$0 sm:$0xff]  ;;  %v1169_v55 = vsub.s32 0, %v1168_v53 }
  0x2c   : > { %v1897_v5 = vld [vmem:[#allocation2] sm:$0xff]  }
  0x2d   : > { %v1898_v6 = vld [vmem:[%s2303_s24] sm:$0xff]   ;;  %1796 = vmatpush3.bf16.msra.mxu1 %v1897_v5 }
  0x2e   : > { %v1899_v7 = vld [vmem:[%s2304_s29] sm:$0xff]   ;;  %1809 = vmatprep.subr.bf16.mxu1 %v1954_v3  ;;  %1792 = vmatmul.mubr.msk.bf16.vlgmr.msra.gmra.mxu0 %vm756_vm3, %v1898_v6 }
  0x2f   : > { %1805 = vmatprep.mubr.msk.bf16.mxu0 %vm1955_vm2, %v1954_v3  ;;  %1802 = vmatpush3.bf16.msra.mxu0 %v1900_v8  ;;  %v1017_v42 = vld [vmem:[%s2305_s1] sm:$0x1] }
  0x30   : > { %1798 = vmatmul.mubr.msk.bf16.vlgmr.msra.gmra.mxu1 %vm816_vm4, %v1899_v7  ;;  %1803 = vmatprep.subr.bf16.mxu0 %v1954_v3  ;;  %v1721_v59 = vld [vmem:[%s730_s0] ss:$0 sm:$0xff] }
  0x31   : > { %1817 = vmatprep.mubr.msk.bf16.mxu1 %vm1955_vm2, %v1954_v3  ;;  %1810 = vmatpush3.bf16.msra.mxu1 %v1902_v10  ;;  %v1722_v0 = vld [vmem:[%s733_s5] ss:$0 sm:$0xff] }
  0x32   : > { %1811 = vmatprep.subr.bf16.mxu1 %v1954_v3 }
  0x33   : > { %1804 = vmatpush3.bf16.msra.mxu0 %v1901_v9 }
  0x34   : > { %1821 = vmatprep.subr.mxu0 %v1954_v3 }
  0x35   : > { %1812 = vmatpush3.bf16.msra.mxu1 %v1903_v22 }
  0x36   : > { %1813 = vmatprep.subr.bf16.mxu1 %v1954_v3 }
  0x39   : > { %1814 = vmatpush3.bf16.msra.mxu1 %v1904_v23 }
  0x3a   : > { %1815 = vmatprep.subr.bf16.mxu1 %v1954_v3 }
  0x3d   : > { %1816 = vmatpush3.bf16.msra.mxu1 %v1905_v24 }
  0xee   : > { %v798_v11 = vpop.f32.mrf.mxu0 }
  0xf0   : > { %v854_v12 = vpop.f32.mrf.mxu1  ;;  %v1793_v13 = vpop.f32.mrf.mxu0 }
  0xf1   : > { %v855_v17 = vadd.f32 %v854_v12, %v798_v11 }
  0xf2   : > { %v1799_v14 = vpop.f32.mrf.mxu1  ;;  %v801_v15 = vpop.f32.mrf.mxu0 }
  0xf4   : > { %v857_v16 = vpop.f32.mrf.mxu1  ;;  %v1794_v19 = vpop.f32.mrf.mxu0 }
  0xf5   : > { %v858_v18 = vadd.f32 %v857_v16, %v801_v15 }
  0xf6   : > { %v1800_v20 = vpop.f32.mrf.mxu1 }
  0xf7   : > { %v861_v21 = vpack.c.bf16 %v858_v18, %v855_v17 }
  0xf9   : > { %1806 = vmatmul.mubr.msk.bf16.vlgmr.msra.gmra.mxu0 %vm885_vm5, %v861_v21 }
  0xfa   : > { %1825 = vmatprep.mubr.msk.f32.mxu0 %vm1955_vm2, %v1954_v3 }
 0x1b9   : > { %v923_v26 = vpop.f32.mrf.mxu0 }
 0x1ba   : > { %v924_v28 = vadd.f32 %v1709_v25, %v923_v26 }
 0x1bb   : > { %v1807_v27 = vpop.f32.mrf.mxu0 }
 0x1bc   : > { %v930_v32 = vmax.f32 %v924_v28, 0.0 }
 0x1bd   : > { %v926_v29 = vpop.f32.mrf.mxu0 }
 0x1be   : > { %v927_v30 = vadd.f32 %v1709_v25, %v926_v29 }
 0x1bf   : > { %v1808_v31 = vpop.f32.mrf.mxu0 }
 0x1c0   : > { %v931_v33 = vmax.f32 %v927_v30, 0.0 }
 0x1c2   : > { %v932_v34 = vpack.c.bf16 %v931_v33, %v930_v32 }
 0x1c4   : > { %1818 = vmatmul.mubr.msk.bf16.vlgmr.msra.gmra.mxu1 %vm972_vm6, %v932_v34 }
 0x284   : > { %v1010_v35 = vpop.f32.mrf.mxu1 }
 0x285   : > { %v1011_v41 = vadd.f32 %v1713_v37, %v1010_v35 }
 0x286   : > { %v1819_v36 = vpop.f32.mrf.mxu1 }
 0x287   : > { %v1091_v44 = vmul.f32 %v1011_v41, %v1011_v41 }
 0x288   : > { %v1013_v38 = vpop.f32.mrf.mxu1 }
 0x289   : > { %v1014_v39 = vadd.f32 %v1713_v37, %v1013_v38 }
 0x28a   : > { %v1820_v40 = vpop.f32.mrf.mxu1 }
 0x28b   : > { %1822 = vmatpush3.msra.mxu0 %v1014_v39  ;;  %v1092_v43 = vmul.f32 %v1014_v39, %v1014_v39 }
 0x28c   : > { %1823 = vmatprep.subr.mxu0 %v1954_v3 }
 0x28d   : > { %1824 = vmatpush3.msra.mxu0 %v1011_v41 }
 0x28e   : > { %1826 = vmatmul.mubr.msk.f32.vlgmr.msra.gmra.mxu0 %vm816_vm4, %v1017_v42  ;;  %1828 = vmatprep.subr.mxu0 %v1954_v3 }
 0x28f   : > { %1829 = vmatpush3.msra.mxu0 %v1092_v43  ;;  %1832 = vmatprep.mubr.msk.f32.mxu0 %vm1955_vm2, %v1954_v3 }
 0x290   : > { %1830 = vmatprep.subr.mxu0 %v1954_v3 }
 0x291   : > { %1831 = vmatpush3.msra.mxu0 %v1091_v44 }
 0x292   : > { %1833 = vmatmul.mubr.msk.f32.vlgmr.msra.gmra.mxu0 %vm816_vm4, %v1017_v42 }
 0x34e   : > { %v1087_v45 = vpop.f32.mrf.mxu0 }
 0x34f   : > { %v1163_v47 = vmul.f32 %v1087_v45, %v1087_v45  ;;  %v1170_v56 = vrot.slane %v1087_v45, %v1169_v55 }
 0x350   : > { %v1827_v46 = vpop.f32.mrf.mxu0 }
 0x351   : > { %v1171_v57 = vsub.f32 %v1011_v41, %v1170_v56  ;;  %v1172_v58 = vsub.f32 %v1014_v39, %v1170_v56 }
 0x352   : > { %v1159_v48 = vpop.f32.mrf.mxu0 }
 0x353   : > { %v1164_v50 = vsub.f32 %v1159_v48, %v1163_v47  ;;  %v1179_v61 = vmul.f32 %v1721_v59, %v1171_v57  ;;  %v1180_v62 = vmul.f32 %v1721_v59, %v1172_v58 }
 0x354   : > { %v1834_v51 = vpop.f32.mrf.mxu0 }
 0x355   : > { %v1165_v52 = vmax.f32 %v1164_v50, 0.0 }
 0x357   : > { %v1181_v54 = vadd.f32 1e-05, %v1165_v52 }
 0x359   : > { %1906 = vrsqrt.f32 %v1181_v54 }
 0x366   : > { %v1907_v60 = vpop.eup %1906 }
 0x367   : > { %v1186_v63 = vrot.slane %v1907_v60, %v1169_v55  ;;  %1201 = sbr.rel (%p1723_p5) target bundleno = 882 (0x372), region = 108 }
 0x369   : > { %v1187_v1 = vmul.f32 %v1186_v63, %v1179_v61  ;;  %v1188_v2 = vmul.f32 %v1186_v63, %v1180_v62 }
 0x36b   : > { %v1196_v3 = vadd.f32 %v1722_v0, %v1187_v1  ;;  %v1197_v4 = vadd.f32 %v1722_v0, %v1188_v2 }
 0x36c   : > { %vm1212_vm7 = vcmask 257024  }
 0x36d   : > { %v1202_v5 = vmax.f32 %v1196_v3, 0.0  ;;  %v1203_v6 = vmax.f32 %v1197_v4, 0.0 }
 0x36f   : > { %v1752_v7 = vpack.c.bf16 %v1202_v5, %v1202_v5  ;;  %v1753_v8 = vpack.c.bf16 %v1203_v6, %v1203_v6 }
 0x371   : > { %1213 = vst.msk [vmem:[#allocation2] sm:$0xf] %vm1212_vm7, %v1752_v7  ;;  %1214 = vst.msk [vmem:[#allocation2 + $0x4] sm:$0xf] %vm1212_vm7, %v1753_v8 }
 0x372 PF: > { %p1726_p6 = scmp.ne.s32.totalorder %s2075_s25, 4 }
 0x373   : > { %s2306_s18 = sld [smem:[#allocation13_spill]] (!%p1726_p6) }
 0x374   : > { %1218 = sbr.rel (%p1726_p6) target bundleno = 1883 (0x75b), region = 112  ;;  %s2307_s27 = sld [smem:[#allocation15_spill]] (!%p1726_p6) }
 0x375   : > { %s2308_s30 = sld [smem:[#allocation14_spill]] (!%p1726_p6) }
 0x376   : > { %s2309_s1 = sld [smem:[#allocation16_spill]] (!%p1726_p6) }
 0x377   : > { %s2310_s21 = sld [smem:[#allocation18_spill]] (!%p1726_p6) }
 0x379   : > { %v1219_v9 = vld [vmem:[%s2273_s11] sm:$0xff]  ;;  %v1908_v10 = vld [vmem:[%s2274_s12 + $0x8] sm:$0xff]   ;;  %v1956_v11 = vmov 0.0   ;;  %vm1957_vm8 = vmmov 0   ;;  %v1910_v13 = vld [vmem:[%s2276_s14 + $0x18] sm:$0xff]   ;;  %vm1580_vm9 = vcmask 15360  }
 0x37a   : > { %1835 = vmatprep.subr.mxu0 %v1956_v11  ;;  %1839 = vmatprep.mubr.msk.f32.mxu0 %vm1957_vm8, %v1956_v11  ;;  %v1909_v12 = vld [vmem:[%s2274_s12] sm:$0xff]   ;;  %v1911_v14 = vld [vmem:[%s2276_s14 + $0x10] sm:$0xff]   ;;  %v1912_v15 = vld [vmem:[%s2276_s14 + $0x8] sm:$0xff]  }
 0x37b   : > { %1836 = vmatpush3.msra.mxu0 %v1197_v4  ;;  %1842 = vmatprep.subr.bf16.mxu1 %v1956_v11  ;;  %v1913_v19 = vld [vmem:[%s2276_s14] sm:$0xff]   ;;  %v1914_v20 = vld [vmem:[%s2278_s16 + $0x8] sm:$0xff]  }
 0x37c   : > { %1837 = vmatprep.subr.mxu0 %v1956_v11  ;;  %1843 = vmatpush3.bf16.msra.mxu1 %v1908_v10  ;;  %v1728_v21 = vld [vmem:[%s2275_s13] ss:$0 sm:$0xff]  ;;  %v1916_v35 = vld [vmem:[%s2307_s27 + $0x8] sm:$0xff]  }
 0x37d   : > { %1838 = vmatpush3.msra.mxu0 %v1196_v3  ;;  %1844 = vmatprep.subr.bf16.mxu1 %v1956_v11  ;;  %v1915_v28 = vld [vmem:[%s2278_s16] sm:$0xff]  }
 0x37e   : > { %1840 = vmatmul.mubr.msk.f32.vlgmr.msra.gmra.mxu0 %vm816_vm4, %v1219_v9  ;;  %1846 = vmatprep.mubr.msk.bf16.mxu1 %vm1957_vm8, %v1956_v11  ;;  %v1732_v29 = vld [vmem:[%s2306_s18] ss:$0 sm:$0xff] }
 0x37f   : > { %1850 = vmatprep.subr.bf16.mxu0 %v1956_v11  ;;  %1858 = vmatprep.mubr.msk.bf16.mxu0 %vm1957_vm8, %v1956_v11  ;;  %v1917_v38 = vld [vmem:[%s2307_s27] sm:$0xff]  }
 0x380   : > { %1845 = vmatpush3.bf16.msra.mxu1 %v1909_v12  ;;  %1851 = vmatpush3.bf16.msra.mxu0 %v1910_v13  ;;  %v1738_v39 = vld [vmem:[%s2308_s30] ss:$0 sm:$0xff] }
 0x381   : > { %1862 = vmatprep.subr.bf16.mxu1 %v1956_v11  ;;  %1852 = vmatprep.subr.bf16.mxu0 %v1956_v11  ;;  %v1742_v47 = vld [vmem:[%s2309_s1] ss:$0 sm:$0xff] }
 0x384   : > { %1853 = vmatpush3.bf16.msra.mxu0 %v1911_v14 }
 0x385   : > { %1854 = vmatprep.subr.bf16.mxu0 %v1956_v11 }
 0x388   : > { %1855 = vmatpush3.bf16.msra.mxu0 %v1912_v15 }
 0x389   : > { %1856 = vmatprep.subr.bf16.mxu0 %v1956_v11 }
 0x38c   : > { %1857 = vmatpush3.bf16.msra.mxu0 %v1913_v19 }
 0x43e   : > { %v1289_v16 = vpop.f32.mrf.mxu0 }
 0x43f   : > { %v1293_v17 = vpack.c.bf16 %v1289_v16, %v1289_v16 }
 0x440   : > { %v1841_v18 = vpop.f32.mrf.mxu0 }
 0x441   : > { %1847 = vmatmul.mubr.msk.bf16.vlgmr.msra.gmra.mxu1 %vm885_vm5, %v1293_v17 }
 0x442   : > { %1866 = vmatprep.mubr.msk.bf16.mxu1 %vm1957_vm8, %v1956_v11  ;;  %1863 = vmatpush3.bf16.msra.mxu1 %v1914_v20 }
 0x443   : > { %1864 = vmatprep.subr.bf16.mxu1 %v1956_v11 }
 0x446   : > { %1865 = vmatpush3.bf16.msra.mxu1 %v1915_v28 }
 0x447   : > { %1870 = vmatprep.subr.bf16.mxu1 %v1956_v11 }
 0x501   : > { %v1354_v22 = vpop.f32.mrf.mxu1 }
 0x502   : > { %v1355_v23 = vadd.f32 %v1728_v21, %v1354_v22 }
 0x503   : > { %v1848_v24 = vpop.f32.mrf.mxu1 }
 0x504   : > { %v1360_v25 = vpack.c.bf16 %v1355_v23, %v1355_v23  ;;  %1579 = vst.msk [vmem:[#allocation3] sm:$0xff] %vm972_vm6, %v1355_v23 }
 0x505   : > { %v1357_v26 = vpop.f32.mrf.mxu1 }
 0x506   : > { %1859 = vmatmul.mubr.msk.bf16.vlgmr.msra.gmra.mxu0 %vm972_vm6, %v1360_v25 }
 0x507   : > { %v1849_v27 = vpop.f32.mrf.mxu1 }
 0x5c6   : > { %v1437_v30 = vpop.f32.mrf.mxu0 }
 0x5c7   : > { %v1438_v31 = vadd.f32 %v1732_v29, %v1437_v30 }
 0x5c8   : > { %v1860_v32 = vpop.f32.mrf.mxu0 }
 0x5c9   : > { %v1443_v33 = vmax.f32 %v1438_v31, 0.0 }
 0x5ca   : > { %v1440_v34 = vpop.f32.mrf.mxu0 }
 0x5cb   : > { %v1444_v36 = vpack.c.bf16 %v1443_v33, %v1443_v33 }
 0x5cc   : > { %v1861_v37 = vpop.f32.mrf.mxu0 }
 0x5cd   : > { %1867 = vmatmul.mubr.msk.bf16.vlgmr.msra.gmra.mxu1 %vm885_vm5, %v1444_v36 }
 0x5ce   : > { %1871 = vmatpush3.bf16.msra.mxu1 %v1916_v35  ;;  %1874 = vmatprep.mubr.msk.bf16.mxu1 %vm1957_vm8, %v1956_v11 }
 0x5cf   : > { %1872 = vmatprep.subr.bf16.mxu1 %v1956_v11 }
 0x5d2   : > { %1873 = vmatpush3.bf16.msra.mxu1 %v1917_v38 }
 0x68d   : > { %v1505_v40 = vpop.f32.mrf.mxu1 }
 0x68e   : > { %v1506_v41 = vadd.f32 %v1738_v39, %v1505_v40 }
 0x68f   : > { %v1868_v42 = vpop.f32.mrf.mxu1 }
 0x690   : > { %v1511_v43 = vmax.f32 %v1506_v41, 0.0 }
 0x691   : > { %v1508_v44 = vpop.f32.mrf.mxu1 }
 0x692   : > { %v1512_v45 = vpack.c.bf16 %v1511_v43, %v1511_v43 }
 0x693   : > { %v1869_v46 = vpop.f32.mrf.mxu1 }
 0x694   : > { %1875 = vmatmul.mubr.msk.bf16.vlgmr.msra.gmra.mxu1 %vm885_vm5, %v1512_v45 }
 0x754   : > { %v1573_v48 = vpop.f32.mrf.mxu1 }
 0x755   : > { %v1574_v49 = vadd.f32 %v1742_v47, %v1573_v48 }
 0x756   : > { %v1876_v50 = vpop.f32.mrf.mxu1 }
 0x757   : > { %1581 = vst.msk [vmem:[%s2310_s21] sm:$0xff] %vm1580_vm9, %v1574_v49 }
 0x758   : > { %v1576_v51 = vpop.f32.mrf.mxu1 }
 0x75a   : > { %v1877_v52 = vpop.f32.mrf.mxu1 }
 0x75b PF: > { %p1882_p7 = scmp.eq.s32.totalorder %s2075_s25, 4  ;;  %s1958_s15 = smov [#allocation3]  }
 0x75c   : > { %s1589_s26 = sshll.u32 %s1958_s15, 4  ;;  %s1590_s26 = int_to_ptr.vmem [resolvable:$true] %s1589_s26 }
 0x75d   : > { %s1918_s0 = scalar_lea.vmem %s1590_s26, 128  ;;  %p1925_p11 = scmp.lt.s32.totalorder %s1590_s26, %s1590_s26 }
 0x75e   : > { %p1919_p8 = scmp.ne.s32.totalorder %s1590_s26, %s1918_s0  ;;  %p1926_p12 = scmp.lt.s32.totalorder %s1918_s0, %s1918_s0 }
 0x760   : > { %p1920_p9 = pnand %p1919_p8, %p1882_p7  ;;  %p1927_p13 = por %p1926_p12, %p1925_p11 }
 0x762   : > { %p1921_p10 = pneg %p1920_p9 }
 0x764   : > { %p1928_p0 = pnand %p1927_p13, %p1921_p10 }
 0x766   : > { %1931 = shalt.err (!%p1928_p0)
}
 0x767   : > { %s2311_s24 = sld [smem:[#allocation17_spill]] }
 0x76d   : > { %1879 = dma.vmem_to_hbm [thread:$0]  (%p1882_p7), %s1590_s26, 128, %s2311_s24, [#allocation4]  }
 0x76e   : > { %1947 = dma.done.wait (%p1882_p7), [#allocation4], 128  }
 0x76f   : > { %1949 = vsyncadd (%p1882_p7), [#allocation4], 4294967168 }
 0x770 PF: > { %s2312_s4 = sld [smem:[#allocation6_spill]] }
 0x776   : > { %s33_s2 = sadd.s32 1, %s2312_s4  }
 0x777   : > { %p30_p1 = scmp.ge.s32.totalorder %s33_s2, 7  }
 0x779   :  { %32 = sbr.rel (!%p30_p1) target bundleno = 14 (0xe), region = 165 }
 0x77e   :  { %1608 = vsyncpa [#allocation4], 1 }
 0x77f   :  { %1610 = vsyncpa [#allocation4 + $0x1], 1 }

</bundles_post_ra>
